<compile_context>
chip_gen: v7x
topology: tpu7x:2x2x1
jax: 0.10.0
libtpu: 0.0.40
codegen_flags: <defaults>
</compile_context>

<pallas_src>
import jax
import jax.numpy as jnp
from jax.experimental import pallas as pl
from jax.experimental.pallas import tpu as pltpu


# ----------------------------------------------------------------------------
# small helpers
# ----------------------------------------------------------------------------
def _round_up(x, m):
    return (x + m - 1) // m * m


def _cdiv(a, b):
    return -(-a // b)


def _tile_rows(m, tm_max):
    """Row-tile size, padded M and step count.

    Always produces >= 2 grid steps so the "parallel" M axis can be sharded
    across both TensorCores on v7x; tm is a multiple of 16 (bf16 sublane pack).
    """
    tm = max(16, min(tm_max, _round_up(_cdiv(m, 2), 16)))
    steps = max(2, _cdiv(m, tm))
    return tm, tm * steps, steps


def _compiler_params():
    return pltpu.CompilerParams(
        dimension_semantics=("parallel",),
        vmem_limit_bytes=32 * 1024 * 1024,
    )


def _block_diag4(w):
    """(K, C) -> (4K, 4C) block-diagonal: one copy of w per pooling-window corner."""
    k, c = w.shape
    out = jnp.zeros((4 * k, 4 * c), w.dtype)
    for r in range(4):
        out = out.at[r * k:(r + 1) * k, r * c:(r + 1) * c].set(w)
    return out


# ----------------------------------------------------------------------------
# Pallas kernels
# ----------------------------------------------------------------------------
def _conv_pool_kernel(cols_ref, w_ref, b_ref, o_ref):
    """Fused conv-as-matmul + 2x2 max-pool + bias + ReLU.

    cols_ref: (TM, 4K) bf16 -- per-row, the 4 pooling-corner patches concat'd
              along K.
    w_ref:    (4K, 4*Co) bf16 block-diagonal weight (one copy per corner).
    b_ref:    (1, Co) f32.
    o_ref:    (TM, Co) bf16.
    """
    co = o_ref.shape[-1]
    # One MXU matmul for all 4 corners; f32 accumulation.
    y = jnp.dot(cols_ref[...], w_ref[...], preferred_element_type=jnp.float32)
    # 2x2 max-pool = max over the 4 corner column blocks.
    pooled = jnp.maximum(jnp.maximum(y[:, 0 * co:1 * co], y[:, 1 * co:2 * co]),
                         jnp.maximum(y[:, 2 * co:3 * co], y[:, 3 * co:4 * co]))
    # Bias + ReLU hoisted after the max (exact; f32 epilogue, v5e-safe).
    o_ref[...] = jnp.maximum(pooled + b_ref[...], 0.0).astype(o_ref.dtype)


def _mlp_kernel(x_ref, w1_ref, b1_ref, w2_ref, b2_ref, w3_ref, b3_ref, o_ref):
    """Fused fc1(ReLU) -> fc2(ReLU) -> fc3.  Intermediates never leave VMEM."""
    h = jnp.dot(x_ref[...], w1_ref[...], preferred_element_type=jnp.float32)
    h = jnp.maximum(h + b1_ref[...], 0.0)
    h = jnp.dot(h.astype(w2_ref.dtype), w2_ref[...],
                preferred_element_type=jnp.float32)
    h = jnp.maximum(h + b2_ref[...], 0.0)
    y = jnp.dot(h.astype(w3_ref.dtype), w3_ref[...],
                preferred_element_type=jnp.float32)
    o_ref[...] = (y + b3_ref[...]).astype(o_ref.dtype)


# ----------------------------------------------------------------------------
# conv + 2x2 max-pool + bias + ReLU (fused) wrapper
# ----------------------------------------------------------------------------
def _packed_pool_patches(x, kh, kw):
    """x: (N, H, W, C) NHWC -> (N*Hp*Wp, 4*kh*kw*C).

    For each pooled output position, the 4 corner patches of the 2x2 pooling
    window are concatenated along K in corner-major order (dy, dx), each with
    inner ordering (i, j, cin) matching the weight reshape in prepare_params.
    """
    n, h, w, c = x.shape
    ho, wo = h - kh + 1, w - kw + 1
    hp, wp = ho // 2, wo // 2
    corner_blocks = []
    for dy in (0, 1):
        for dx in (0, 1):
            pats = []
            for i in range(kh):
                for j in range(kw):
                    pats.append(x[:, dy + i: dy + i + 2 * hp: 2,
                                  dx + j: dx + j + 2 * wp: 2, :])   # (N,Hp,Wp,C)
            corner_blocks.append(jnp.stack(pats, axis=3))           # (N,Hp,Wp,kh*kw,C)
    p = jnp.concatenate(corner_blocks, axis=3)                       # (N,Hp,Wp,4*kh*kw,C)
    return p.reshape(n * hp * wp, 4 * kh * kw * c)


def conv_relu_pool(x_nhwc, w_blk, b_mat, kh, kw, *, tm_max=1024):
    """x_nhwc: (N, H, W, Cin) bf16; w_blk: (4*kh*kw*Cin, 4*Cout) bf16 block-diag;
    b_mat: (1, Cout) f32  ->  (N, Hp, Wp, Cout) bf16 (pooled, ReLU'd)."""
    n, h, w, cin = x_nhwc.shape
    k4, co4 = w_blk.shape
    co = co4 // 4
    assert k4 == 4 * kh * kw * cin
    hp, wp = (h - kh + 1) // 2, (w - kw + 1) // 2
    m = n * hp * wp

    cols = _packed_pool_patches(x_nhwc, kh, kw).astype(jnp.bfloat16)  # (m, 4K)

    tm, m_pad, steps = _tile_rows(m, tm_max)
    if m_pad != m:
        cols = jnp.pad(cols, ((0, m_pad - m), (0, 0)))

    cost = pl.CostEstimate(
        flops=2 * m_pad * k4 * co4,
        transcendentals=0,
        bytes_accessed=m_pad * k4 * 2 + k4 * co4 * 2 + co * 4 + m_pad * co * 2,
    )

    out = pl.pallas_call(
        _conv_pool_kernel,
        out_shape=jax.ShapeDtypeStruct((m_pad, co), jnp.bfloat16),
        grid=(steps,),
        in_specs=[pl.BlockSpec((tm, k4), lambda i: (i, 0)),
                  pl.BlockSpec((k4, co4), lambda i: (0, 0)),
                  pl.BlockSpec((1, co), lambda i: (0, 0))],
        out_specs=pl.BlockSpec((tm, co), lambda i: (i, 0)),
        compiler_params=_compiler_params(),
        cost_estimate=cost,
    )(cols, w_blk, b_mat)

    return out[:m].reshape(n, hp, wp, co)


# ----------------------------------------------------------------------------
# fused fc1 -> fc2 -> fc3 wrapper
# ----------------------------------------------------------------------------
def mlp3(x, w1, b1, w2, b2, w3, b3, *, tm_max=512, n_out=10):
    """x: (N, 400) bf16; weights pre-transposed / zero-padded bf16
    ((512,128), (128,128), (128,128)); biases f32 (1,128).  Returns (N, 10) f32."""
    m, k = x.shape
    kpad = w1.shape[0]                                   # 512 (contraction pad)
    h1n, h2n, outn = w1.shape[1], w2.shape[1], w3.shape[1]

    tm, m_pad, steps = _tile_rows(m, tm_max)
    x = jnp.pad(x, ((0, m_pad - m), (0, kpad - k))).astype(jnp.bfloat16)

    full = lambda shape: pl.BlockSpec(shape, lambda i: (0, 0))
    cost = pl.CostEstimate(
        flops=2 * m_pad * (kpad * h1n + h1n * h2n + h2n * outn),
        transcendentals=0,
        bytes_accessed=(m_pad * kpad * 2
                        + (kpad * h1n + h1n * h2n + h2n * outn) * 2
                        + (h1n + h2n + outn) * 4
                        + m_pad * outn * 4),
    )

    out = pl.pallas_call(
        _mlp_kernel,
        out_shape=jax.ShapeDtypeStruct((m_pad, outn), jnp.float32),
        grid=(steps,),
        in_specs=[pl.BlockSpec((tm, kpad), lambda i: (i, 0)),
                  full((kpad, h1n)), full((1, h1n)),
                  full((h1n, h2n)), full((1, h2n)),
                  full((h2n, outn)), full((1, outn))],
        out_specs=pl.BlockSpec((tm, outn), lambda i: (i, 0)),
        compiler_params=_compiler_params(),
        cost_estimate=cost,
    )(x, w1, b1, w2, b2, w3, b3)

    return out[:m, :n_out]


# ----------------------------------------------------------------------------
# Parameter init (PyTorch shapes) + one-time prep into kernel-friendly layout
# ----------------------------------------------------------------------------
def init_params(key):
    ks = jax.random.split(key, 10)

    def u(k, shape, fan_in):
        bound = 1.0 / jnp.sqrt(fan_in)
        return jax.random.uniform(k, shape, jnp.float32, -bound, bound)

    return {
        "conv1_w": u(ks[0], (6, 1, 5, 5), 1 * 5 * 5),
        "conv1_b": u(ks[1], (6,), 1 * 5 * 5),
        "conv2_w": u(ks[2], (16, 6, 5, 5), 6 * 5 * 5),
        "conv2_b": u(ks[3], (16,), 6 * 5 * 5),
        "fc1_w": u(ks[4], (120, 400), 400),
        "fc1_b": u(ks[5], (120,), 400),
        "fc2_w": u(ks[6], (84, 120), 120),
        "fc2_b": u(ks[7], (84,), 120),
        "fc3_w": u(ks[8], (10, 84), 84),
        "fc3_b": u(ks[9], (10,), 84),
    }


def prepare_params(p):
    """One-time prep (outside the jitted forward):
      * conv weights -> (kh*kw*Cin, Cout) with (i, j, cin) row order, conv1 Cout
        padded 6->8, conv2 built with Cin=8 (zero rows for pad channels), then
        block-diagonalized (one copy per pooling corner) and cast to bf16.
      * fc1 columns permuted from PyTorch (c,h,w) flatten order to NHWC (h,w,c),
        contraction padded 400->512; fc2/fc3 padded to 128-wide; fc3 output
        padded 10->128.  Biases stay f32."""
    def pad_to(a, shape):
        return jnp.pad(a, [(0, s - d) for s, d in zip(shape, a.shape)])

    kp = {}
    # conv1: (6,1,5,5) -> (5,5,1,6) -> (25,6) -> pad Cout to 8 -> block-diag (100,32)
    w1 = jnp.transpose(p["conv1_w"], (2, 3, 1, 0)).reshape(25, 6)
    kp["conv1_w"] = _block_diag4(pad_to(w1, (25, 8))).astype(jnp.bfloat16)
    kp["conv1_b"] = pad_to(p["conv1_b"], (8,)).reshape(1, 8).astype(jnp.float32)

    # conv2: (16,6,5,5) -> (5,5,6,16) -> pad Cin 6->8 -> (200,16) -> block-diag (800,64)
    w2 = jnp.transpose(p["conv2_w"], (2, 3, 1, 0))                   # (5,5,6,16)
    w2 = jnp.pad(w2, ((0, 0), (0, 0), (0, 2), (0, 0))).reshape(200, 16)
    kp["conv2_w"] = _block_diag4(w2).astype(jnp.bfloat16)
    kp["conv2_b"] = p["conv2_b"].reshape(1, 16).astype(jnp.float32)

    # fc1: reorder input dim (c*25 + h*5 + w) -> (h*80 + w*16 + c); (400,120) -> (512,128)
    w_fc1 = jnp.transpose(p["fc1_w"].reshape(120, 16, 5, 5), (0, 2, 3, 1)).reshape(120, 400).T
    kp["fc1_w"] = pad_to(w_fc1, (512, 128)).astype(jnp.bfloat16)
    kp["fc1_b"] = pad_to(p["fc1_b"], (128,)).reshape(1, 128).astype(jnp.float32)

    kp["fc2_w"] = pad_to(p["fc2_w"].T, (128, 128)).astype(jnp.bfloat16)
    kp["fc2_b"] = pad_to(p["fc2_b"], (128,)).reshape(1, 128).astype(jnp.float32)

    kp["fc3_w"] = pad_to(p["fc3_w"].T, (128, 128)).astype(jnp.bfloat16)
    kp["fc3_b"] = pad_to(p["fc3_b"], (128,)).reshape(1, 128).astype(jnp.float32)
    return kp


# ----------------------------------------------------------------------------
# Forward pass (mirrors the PyTorch module)
# ----------------------------------------------------------------------------
@jax.jit
def forward(kp, x):
    # x: (N, 1, 32, 32) f32  ->  NHWC bf16 (Cin=1, so this is a cheap layout op)
    n = x.shape[0]
    h = jnp.transpose(x, (0, 2, 3, 1)).astype(jnp.bfloat16)            # (N, 32, 32, 1)
    h = conv_relu_pool(h, kp["conv1_w"], kp["conv1_b"], 5, 5)          # (N, 14, 14, 8)  ch 6,7 == 0
    h = conv_relu_pool(h, kp["conv2_w"], kp["conv2_b"], 5, 5)          # (N, 5, 5, 16)
    h = h.reshape(n, 400)                                              # NHWC flatten (h, w, c)
    return mlp3(h, kp["fc1_w"], kp["fc1_b"], kp["fc2_w"], kp["fc2_b"],
                kp["fc3_w"], kp["fc3_b"])                              # (N, 10) f32


if __name__ == "__main__":
    key = jax.random.PRNGKey(0)
    pkey, xkey = jax.random.split(key)
    params = init_params(pkey)
    kparams = prepare_params(params)

    # LeNet geometry requires 32x32 single-channel input so that 16*5*5 = 400.
    x = jax.random.normal(xkey, (2, 1, 32, 32), dtype=jnp.float32)

    out = forward(kparams, x)
    jax.block_until_ready(out)
    assert out.shape == (2, 10) and out.dtype == jnp.float32
    print("KERNEL_OK")
</pallas_src>

<mosaic_0001>
module attributes {stable_mosaic.version = 11 : i64} {
  func.func @_conv_pool_kernel(%arg0: i32, %arg1: memref<208x100xbf16, #tpu.memory_space<vmem>>, %arg2: memref<100x32xbf16, #tpu.memory_space<vmem>>, %arg3: memref<1x8xf32, #tpu.memory_space<vmem>>, %arg4: memref<208x8xbf16, #tpu.memory_space<vmem>>) attributes {dimension_semantics = [#tpu.dimension_semantics<parallel>], iteration_bounds = array<i64: 2>, scalar_prefetch = 0 : i64, scratch_operands = 0 : i64, tpu.core_type = #tpu.core_type<tc>, window_params = [{transform_indices = @transform_0, window_bounds = array<i64: 208, 100>}, {pipeline_mode = #tpu.pipeline_mode<synchronous>, transform_indices = @transform_1, window_bounds = array<i64: 100, 32>}, {pipeline_mode = #tpu.pipeline_mode<synchronous>, transform_indices = @transform_2, window_bounds = array<i64: 1, 8>}, {transform_indices = @transform_3, window_bounds = array<i64: 208, 8>}]} {
    %c0 = arith.constant 0 : index
    %c0_0 = arith.constant 0 : index
    %0 = vector.load %arg1[%c0, %c0_0] : memref<208x100xbf16, #tpu.memory_space<vmem>>, vector<208x100xbf16>
    %c0_1 = arith.constant 0 : index
    %c0_2 = arith.constant 0 : index
    %1 = vector.load %arg2[%c0_1, %c0_2] : memref<100x32xbf16, #tpu.memory_space<vmem>>, vector<100x32xbf16>
    %cst = arith.constant dense<0.000000e+00> : vector<208x32xf32>
    %2 = tpu.matmul %0, %1, %cst {dimension_numbers = #tpu.dot_dimension_numbers<[1], [0], [0], [1], [0, 0, 1, 1], [], []>} : vector<208x100xbf16>, vector<100x32xbf16>, vector<208x32xf32> -> vector<208x32xf32>
    %3 = vector.extract_strided_slice %2 {offsets = [0, 0], sizes = [208, 8], strides = [1, 1]} : vector<208x32xf32> to vector<208x8xf32>
    %4 = vector.extract_strided_slice %2 {offsets = [0, 8], sizes = [208, 8], strides = [1, 1]} : vector<208x32xf32> to vector<208x8xf32>
    %5 = arith.maximumf %3, %4 : vector<208x8xf32>
    %6 = vector.extract_strided_slice %2 {offsets = [0, 16], sizes = [208, 8], strides = [1, 1]} : vector<208x32xf32> to vector<208x8xf32>
    %7 = vector.extract_strided_slice %2 {offsets = [0, 24], sizes = [208, 8], strides = [1, 1]} : vector<208x32xf32> to vector<208x8xf32>
    %8 = arith.maximumf %6, %7 : vector<208x8xf32>
    %9 = arith.maximumf %5, %8 : vector<208x8xf32>
    %c0_3 = arith.constant 0 : index
    %c0_4 = arith.constant 0 : index
    %10 = vector.load %arg3[%c0_3, %c0_4] : memref<1x8xf32, #tpu.memory_space<vmem>>, vector<1x8xf32>
    %11 = vector.broadcast %10 : vector<1x8xf32> to vector<208x8xf32>
    %12 = arith.addf %9, %11 : vector<208x8xf32>
    %cst_5 = arith.constant 0.000000e+00 : f32
    %13 = vector.broadcast %cst_5 : f32 to vector<208x8xf32>
    %14 = arith.maximumf %12, %13 : vector<208x8xf32>
    %15 = arith.truncf %14 : vector<208x8xf32> to vector<208x8xbf16>
    %c0_6 = arith.constant 0 : index
    %c0_7 = arith.constant 0 : index
    %16 = vector.load %arg4[%c0_6, %c0_7] : memref<208x8xbf16, #tpu.memory_space<vmem>>, vector<208x8xbf16>
    tpu.vector_store %arg4[%c0_6, %c0_7], %15 {strides = array<i32>} : memref<208x8xbf16, #tpu.memory_space<vmem>>, vector<208x8xbf16>,
    return
  }
  func.func @transform_0(%arg0: i32) -> (i32, i32) {
    %c0_i32 = arith.constant 0 : i32
    %c0_i32_0 = arith.constant 0 : i32
    return %arg0, %c0_i32 : i32, i32
  }
  func.func @transform_1(%arg0: i32) -> (i32, i32) {
    %c0_i32 = arith.constant 0 : i32
    %c0_i32_0 = arith.constant 0 : i32
    %c0_i32_1 = arith.constant 0 : i32
    return %c0_i32, %c0_i32_0 : i32, i32
  }
  func.func @transform_2(%arg0: i32) -> (i32, i32) {
    %c0_i32 = arith.constant 0 : i32
    %c0_i32_0 = arith.constant 0 : i32
    %c0_i32_1 = arith.constant 0 : i32
    return %c0_i32, %c0_i32_0 : i32, i32
  }
  func.func @transform_3(%arg0: i32) -> (i32, i32) {
    %c0_i32 = arith.constant 0 : i32
    %c0_i32_0 = arith.constant 0 : i32
    return %arg0, %c0_i32 : i32, i32
  }
}

module attributes {stable_mosaic.version = 11 : i64} {
  func.func @_conv_pool_kernel(%arg0: i32, %arg1: memref<32x800xbf16, #tpu.memory_space<vmem>>, %arg2: memref<800x64xbf16, #tpu.memory_space<vmem>>, %arg3: memref<1x16xf32, #tpu.memory_space<vmem>>, %arg4: memref<32x16xbf16, #tpu.memory_space<vmem>>) attributes {dimension_semantics = [#tpu.dimension_semantics<parallel>], iteration_bounds = array<i64: 2>, scalar_prefetch = 0 : i64, scratch_operands = 0 : i64, tpu.core_type = #tpu.core_type<tc>, window_params = [{transform_indices = @transform_0, window_bounds = array<i64: 32, 800>}, {pipeline_mode = #tpu.pipeline_mode<synchronous>, transform_indices = @transform_1, window_bounds = array<i64: 800, 64>}, {pipeline_mode = #tpu.pipeline_mode<synchronous>, transform_indices = @transform_2, window_bounds = array<i64: 1, 16>}, {transform_indices = @transform_3, window_bounds = array<i64: 32, 16>}]} {
    %c0 = arith.constant 0 : index
    %c0_0 = arith.constant 0 : index
    %0 = vector.load %arg1[%c0, %c0_0] : memref<32x800xbf16, #tpu.memory_space<vmem>>, vector<32x800xbf16>
    %c0_1 = arith.constant 0 : index
    %c0_2 = arith.constant 0 : index
    %1 = vector.load %arg2[%c0_1, %c0_2] : memref<800x64xbf16, #tpu.memory_space<vmem>>, vector<800x64xbf16>
    %cst = arith.constant dense<0.000000e+00> : vector<32x64xf32>
    %2 = tpu.matmul %0, %1, %cst {dimension_numbers = #tpu.dot_dimension_numbers<[1], [0], [0], [1], [0, 0, 1, 1], [], []>} : vector<32x800xbf16>, vector<800x64xbf16>, vector<32x64xf32> -> vector<32x64xf32>
    %3 = vector.extract_strided_slice %2 {offsets = [0, 0], sizes = [32, 16], strides = [1, 1]} : vector<32x64xf32> to vector<32x16xf32>
    %4 = vector.extract_strided_slice %2 {offsets = [0, 16], sizes = [32, 16], strides = [1, 1]} : vector<32x64xf32> to vector<32x16xf32>
    %5 = arith.maximumf %3, %4 : vector<32x16xf32>
    %6 = vector.extract_strided_slice %2 {offsets = [0, 32], sizes = [32, 16], strides = [1, 1]} : vector<32x64xf32> to vector<32x16xf32>
    %7 = vector.extract_strided_slice %2 {offsets = [0, 48], sizes = [32, 16], strides = [1, 1]} : vector<32x64xf32> to vector<32x16xf32>
    %8 = arith.maximumf %6, %7 : vector<32x16xf32>
    %9 = arith.maximumf %5, %8 : vector<32x16xf32>
    %c0_3 = arith.constant 0 : index
    %c0_4 = arith.constant 0 : index
    %10 = vector.load %arg3[%c0_3, %c0_4] : memref<1x16xf32, #tpu.memory_space<vmem>>, vector<1x16xf32>
    %11 = vector.broadcast %10 : vector<1x16xf32> to vector<32x16xf32>
    %12 = arith.addf %9, %11 : vector<32x16xf32>
    %cst_5 = arith.constant 0.000000e+00 : f32
    %13 = vector.broadcast %cst_5 : f32 to vector<32x16xf32>
    %14 = arith.maximumf %12, %13 : vector<32x16xf32>
    %15 = arith.truncf %14 : vector<32x16xf32> to vector<32x16xbf16>
    %c0_6 = arith.constant 0 : index
    %c0_7 = arith.constant 0 : index
    %16 = vector.load %arg4[%c0_6, %c0_7] : memref<32x16xbf16, #tpu.memory_space<vmem>>, vector<32x16xbf16>
    tpu.vector_store %arg4[%c0_6, %c0_7], %15 {strides = array<i32>} : memref<32x16xbf16, #tpu.memory_space<vmem>>, vector<32x16xbf16>,
    return
  }
  func.func @transform_0(%arg0: i32) -> (i32, i32) {
    %c0_i32 = arith.constant 0 : i32
    %c0_i32_0 = arith.constant 0 : i32
    return %arg0, %c0_i32 : i32, i32
  }
  func.func @transform_1(%arg0: i32) -> (i32, i32) {
    %c0_i32 = arith.constant 0 : i32
    %c0_i32_0 = arith.constant 0 : i32
    %c0_i32_1 = arith.constant 0 : i32
    return %c0_i32, %c0_i32_0 : i32, i32
  }
  func.func @transform_2(%arg0: i32) -> (i32, i32) {
    %c0_i32 = arith.constant 0 : i32
    %c0_i32_0 = arith.constant 0 : i32
    %c0_i32_1 = arith.constant 0 : i32
    return %c0_i32, %c0_i32_0 : i32, i32
  }
  func.func @transform_3(%arg0: i32) -> (i32, i32) {
    %c0_i32 = arith.constant 0 : i32
    %c0_i32_0 = arith.constant 0 : i32
    return %arg0, %c0_i32 : i32, i32
  }
}

module attributes {stable_mosaic.version = 11 : i64} {
  func.func @_mlp_kernel(%arg0: i32, %arg1: memref<16x512xbf16, #tpu.memory_space<vmem>>, %arg2: memref<512x128xbf16, #tpu.memory_space<vmem>>, %arg3: memref<1x128xf32, #tpu.memory_space<vmem>>, %arg4: memref<128x128xbf16, #tpu.memory_space<vmem>>, %arg5: memref<1x128xf32, #tpu.memory_space<vmem>>, %arg6: memref<128x128xbf16, #tpu.memory_space<vmem>>, %arg7: memref<1x128xf32, #tpu.memory_space<vmem>>, %arg8: memref<16x128xf32, #tpu.memory_space<vmem>>) attributes {dimension_semantics = [#tpu.dimension_semantics<parallel>], iteration_bounds = array<i64: 2>, scalar_prefetch = 0 : i64, scratch_operands = 0 : i64, tpu.core_type = #tpu.core_type<tc>, window_params = [{transform_indices = @transform_0, window_bounds = array<i64: 16, 512>}, {pipeline_mode = #tpu.pipeline_mode<synchronous>, transform_indices = @transform_1, window_bounds = array<i64: 512, 128>}, {pipeline_mode = #tpu.pipeline_mode<synchronous>, transform_indices = @transform_2, window_bounds = array<i64: 1, 128>}, {pipeline_mode = #tpu.pipeline_mode<synchronous>, transform_indices = @transform_3, window_bounds = array<i64: 128, 128>}, {pipeline_mode = #tpu.pipeline_mode<synchronous>, transform_indices = @transform_4, window_bounds = array<i64: 1, 128>}, {pipeline_mode = #tpu.pipeline_mode<synchronous>, transform_indices = @transform_5, window_bounds = array<i64: 128, 128>}, {pipeline_mode = #tpu.pipeline_mode<synchronous>, transform_indices = @transform_6, window_bounds = array<i64: 1, 128>}, {transform_indices = @transform_7, window_bounds = array<i64: 16, 128>}]} {
    %c0 = arith.constant 0 : index
    %c0_0 = arith.constant 0 : index
    %0 = vector.load %arg1[%c0, %c0_0] : memref<16x512xbf16, #tpu.memory_space<vmem>>, vector<16x512xbf16>
    %c0_1 = arith.constant 0 : index
    %c0_2 = arith.constant 0 : index
    %1 = vector.load %arg2[%c0_1, %c0_2] : memref<512x128xbf16, #tpu.memory_space<vmem>>, vector<512x128xbf16>
    %cst = arith.constant dense<0.000000e+00> : vector<16x128xf32>
    %2 = tpu.matmul %0, %1, %cst {dimension_numbers = #tpu.dot_dimension_numbers<[1], [0], [0], [1], [0, 0, 1, 1], [], []>} : vector<16x512xbf16>, vector<512x128xbf16>, vector<16x128xf32> -> vector<16x128xf32>
    %c0_3 = arith.constant 0 : index
    %c0_4 = arith.constant 0 : index
    %3 = vector.load %arg3[%c0_3, %c0_4] : memref<1x128xf32, #tpu.memory_space<vmem>>, vector<1x128xf32>
    %4 = vector.broadcast %3 : vector<1x128xf32> to vector<16x128xf32>
    %5 = arith.addf %2, %4 : vector<16x128xf32>
    %cst_5 = arith.constant 0.000000e+00 : f32
    %6 = vector.broadcast %cst_5 : f32 to vector<16x128xf32>
    %7 = arith.maximumf %5, %6 : vector<16x128xf32>
    %8 = arith.truncf %7 : vector<16x128xf32> to vector<16x128xbf16>
    %c0_6 = arith.constant 0 : index
    %c0_7 = arith.constant 0 : index
    %9 = vector.load %arg4[%c0_6, %c0_7] : memref<128x128xbf16, #tpu.memory_space<vmem>>, vector<128x128xbf16>
    %cst_8 = arith.constant dense<0.000000e+00> : vector<16x128xf32>
    %10 = tpu.matmul %8, %9, %cst_8 {dimension_numbers = #tpu.dot_dimension_numbers<[1], [0], [0], [1], [0, 0, 1, 1], [], []>} : vector<16x128xbf16>, vector<128x128xbf16>, vector<16x128xf32> -> vector<16x128xf32>
    %c0_9 = arith.constant 0 : index
    %c0_10 = arith.constant 0 : index
    %11 = vector.load %arg5[%c0_9, %c0_10] : memref<1x128xf32, #tpu.memory_space<vmem>>, vector<1x128xf32>
    %12 = vector.broadcast %11 : vector<1x128xf32> to vector<16x128xf32>
    %13 = arith.addf %10, %12 : vector<16x128xf32>
    %cst_11 = arith.constant 0.000000e+00 : f32
    %14 = vector.broadcast %cst_11 : f32 to vector<16x128xf32>
    %15 = arith.maximumf %13, %14 : vector<16x128xf32>
    %16 = arith.truncf %15 : vector<16x128xf32> to vector<16x128xbf16>
    %c0_12 = arith.constant 0 : index
    %c0_13 = arith.constant 0 : index
    %17 = vector.load %arg6[%c0_12, %c0_13] : memref<128x128xbf16, #tpu.memory_space<vmem>>, vector<128x128xbf16>
    %cst_14 = arith.constant dense<0.000000e+00> : vector<16x128xf32>
    %18 = tpu.matmul %16, %17, %cst_14 {dimension_numbers = #tpu.dot_dimension_numbers<[1], [0], [0], [1], [0, 0, 1, 1], [], []>} : vector<16x128xbf16>, vector<128x128xbf16>, vector<16x128xf32> -> vector<16x128xf32>
    %c0_15 = arith.constant 0 : index
    %c0_16 = arith.constant 0 : index
    %19 = vector.load %arg7[%c0_15, %c0_16] : memref<1x128xf32, #tpu.memory_space<vmem>>, vector<1x128xf32>
    %20 = vector.broadcast %19 : vector<1x128xf32> to vector<16x128xf32>
    %21 = arith.addf %18, %20 : vector<16x128xf32>
    %c0_17 = arith.constant 0 : index
    %c0_18 = arith.constant 0 : index
    %22 = vector.load %arg8[%c0_17, %c0_18] : memref<16x128xf32, #tpu.memory_space<vmem>>, vector<16x128xf32>
    tpu.vector_store %arg8[%c0_17, %c0_18], %21 {strides = array<i32>} : memref<16x128xf32, #tpu.memory_space<vmem>>, vector<16x128xf32>,
    return
  }
  func.func @transform_0(%arg0: i32) -> (i32, i32) {
    %c0_i32 = arith.constant 0 : i32
    %c0_i32_0 = arith.constant 0 : i32
    return %arg0, %c0_i32 : i32, i32
  }
  func.func @transform_1(%arg0: i32) -> (i32, i32) {
    %c0_i32 = arith.constant 0 : i32
    %c0_i32_0 = arith.constant 0 : i32
    %c0_i32_1 = arith.constant 0 : i32
    return %c0_i32, %c0_i32_0 : i32, i32
  }
  func.func @transform_2(%arg0: i32) -> (i32, i32) {
    %c0_i32 = arith.constant 0 : i32
    %c0_i32_0 = arith.constant 0 : i32
    %c0_i32_1 = arith.constant 0 : i32
    return %c0_i32, %c0_i32_0 : i32, i32
  }
  func.func @transform_3(%arg0: i32) -> (i32, i32) {
    %c0_i32 = arith.constant 0 : i32
    %c0_i32_0 = arith.constant 0 : i32
    %c0_i32_1 = arith.constant 0 : i32
    return %c0_i32, %c0_i32_0 : i32, i32
  }
  func.func @transform_4(%arg0: i32) -> (i32, i32) {
    %c0_i32 = arith.constant 0 : i32
    %c0_i32_0 = arith.constant 0 : i32
    %c0_i32_1 = arith.constant 0 : i32
    return %c0_i32, %c0_i32_0 : i32, i32
  }
  func.func @transform_5(%arg0: i32) -> (i32, i32) {
    %c0_i32 = arith.constant 0 : i32
    %c0_i32_0 = arith.constant 0 : i32
    %c0_i32_1 = arith.constant 0 : i32
    return %c0_i32, %c0_i32_0 : i32, i32
  }
  func.func @transform_6(%arg0: i32) -> (i32, i32) {
    %c0_i32 = arith.constant 0 : i32
    %c0_i32_0 = arith.constant 0 : i32
    %c0_i32_1 = arith.constant 0 : i32
    return %c0_i32, %c0_i32_0 : i32, i32
  }
  func.func @transform_7(%arg0: i32) -> (i32, i32) {
    %c0_i32 = arith.constant 0 : i32
    %c0_i32_0 = arith.constant 0 : i32
    return %arg0, %c0_i32 : i32, i32
  }
}

</mosaic_0001>

<bundles_post_ra>
// kernel: forward.3
= control target key start
LH: loop header
LB: loop body
LE: loop exit
PB: predicated region body
PF: predicated region fallthrough
CT: control target
= control target key end

     0   :  { %s1264_s12 = smov 0   ;;  %s1722_s0 = inlined_call_operand.vmem [shape: bf16[416,100], index: 0, kind: input, shape index: {}]   ;;  %s1723_s1 = inlined_call_operand.vmem [shape: bf16[100,32], index: 1, kind: input, shape index: {}]   ;;  %s1724_s2 = inlined_call_operand.vmem [shape: f32[1,8], index: 2, kind: input, shape index: {}]   ;;  %s1725_s3 = inlined_call_operand.vmem [shape: bf16[416,8], index: 3, kind: output, shape index: {}]  }
   0x1 LB: > { %s1005_s13 = sadd.s32 4294967295, %s1238_s12   ;;  %p1009_p0 = scmp.ge.s32.totalorder %s1238_s12, 1  ;;  %s1238_s12 = sphi %s1264_s12, %s13_s12  }
   0x2   : > { %p138_p1 = scmp.lt.s32.totalorder %s1238_s12, 3 }
   0x4   : > { %p139_p2 = pnand %p1009_p0, %p138_p1 }
   0x5   : > { %v1212_v0 = vld [vmem:[%s1723_s1] sm:$0xff] (!%p139_p2)   ;;  %v1240_v1 = vmov (!%p139_p2), 0.0   ;;  %v1213_v2 = vld [vmem:[%s1723_s1 + $0x8] sm:$0xff] (!%p139_p2)   ;;  %s162_s18 = smul.u32 (!%p139_p2), 26, %s1005_s13  ;;  %vm1241_vm0 = vmmov (!%p139_p2), 0   ;;  %v1214_v3 = vld [vmem:[%s1723_s1 + $0x10] sm:$0xff] (!%p139_p2)  }
   0x6   : > { %142 = sbr.rel (%p139_p2) target bundleno = 543 (0x21f), region = 32  ;;  %1120 = vmatprep.subr.bf16.mxu0 (!%p139_p2), %v1240_v1  ;;  %1186 = vmatprep.subr.bf16.mxu1 (!%p139_p2), %v1240_v1  ;;  %v1215_v4 = vld [vmem:[%s1723_s1 + $0x18] sm:$0xff] (!%p139_p2)   ;;  %v1216_v5 = vld [vmem:[%s1723_s1 + $0x20] sm:$0xff] (!%p139_p2)   ;;  %v1218_v6 = vld [vmem:[%s1723_s1 + $0x30] ss:$0 sps:$4 sm:$0x33] (!%p139_p2)  }
   0x7   : > { %1121 = vmatpush3.bf16.msra.mxu0 (!%p139_p2), %v1212_v0  ;;  %1193 = vmatpush3.bf16.msra.mxu1 (!%p139_p2), %v1212_v0  ;;  %p163_p3 = scmp.lt.s32.totalorder (!%p139_p2), %s162_s18, 51  ;;  %v1217_v7 = vld [vmem:[%s1723_s1 + $0x28] sm:$0xff] (!%p139_p2)   ;;  %vm358_vm1 = vcmask (!%p139_p2), 1041408   ;;  %vm318_vm2 = vcmask (!%p139_p2), 818176   ;;  %s1242_s6 = smov (!%p139_p2), 120   ;;  %vm922_vm3 = vcmask (!%p139_p2), 60416  }
   0x8   : > { %1122 = vmatprep.subr.bf16.mxu0 (!%p139_p2), %v1240_v1  ;;  %1187 = vmatprep.subr.bf16.mxu1 (!%p139_p2), %v1240_v1  ;;  %v360_v8 = vsel (!%p139_p2), %vm358_vm1, %v1218_v6, 0  ;;  %s1243_s7 = smov (!%p139_p2), 112  }
   0x9   : > { %1134 = vmatprep.mubr.msk.bf16.mxu0 (!%p139_p2), %vm1241_vm0, %v1240_v1  ;;  %1162 = vmatprep.mubr.msk.bf16.mxu1 (!%p139_p2), %vm1241_vm0, %v1240_v1 }
   0xb   : > { %1123 = vmatpush3.bf16.msra.mxu0 (!%p139_p2), %v1213_v2  ;;  %1194 = vmatpush3.bf16.msra.mxu1 (!%p139_p2), %v1213_v2 }
   0xc   : > { %1124 = vmatprep.subr.bf16.mxu0 (!%p139_p2), %v1240_v1  ;;  %1188 = vmatprep.subr.bf16.mxu1 (!%p139_p2), %v1240_v1 }
   0xd   : > { %s1727_s18 = smov (!%p163_p3, %s162_s18), 51 }
   0xe   : > { %s1010_s21 = sshll.u32 %s1727_s18, 2 }
   0xf   : > { %1125 = vmatpush3.bf16.msra.mxu0 %v1214_v3  ;;  %1195 = vmatpush3.bf16.msra.mxu1 %v1214_v3  ;;  %s1302_s26 = scalar_lea.vmem %s1722_s0, %s1010_s21  ;;  %s1616_s13 = scalar_lea.vmem %s1725_s3, %s1010_s21 }
  0x10   : > { %1126 = vmatprep.subr.bf16.mxu0 %v1240_v1  ;;  %1189 = vmatprep.subr.bf16.mxu1 %v1240_v1  ;;  %v1219_v9 = vld [vmem:[%s1302_s26] sm:$0xff]   ;;  %v1220_v10 = vld [vmem:[%s1302_s26 + $0x38] sm:$0xff]   ;;  %v1221_v11 = vld [vmem:[%s1302_s26 + $0x8] sm:$0xff]  }
  0x11   : > { %v1222_v12 = vld [vmem:[%s1302_s26 + $0x40] sm:$0xff]   ;;  %v1223_v13 = vld [vmem:[%s1302_s26 + $0x10] sm:$0xff]   ;;  %v1224_v14 = vld [vmem:[%s1302_s26 + $0x48] sm:$0xff]  }
  0x12   : > { %v1225_v15 = vld [vmem:[%s1302_s26 + $0x18] sm:$0xff]   ;;  %v1226_v16 = vld [vmem:[%s1302_s26 + $0x50] sm:$0xff]   ;;  %v1227_v17 = vld [vmem:[%s1302_s26 + $0x20] sm:$0xff]  }
  0x13   : > { %1127 = vmatpush3.bf16.msra.mxu0 %v1215_v4  ;;  %1196 = vmatpush3.bf16.msra.mxu1 %v1215_v4  ;;  %v1228_v18 = vld [vmem:[%s1302_s26 + $0x58] sm:$0xff]   ;;  %v1229_v19 = vld [vmem:[%s1302_s26 + $0x28] sm:$0xff]   ;;  %v1231_v20 = vld [vmem:[%s1302_s26 + $0x60] sm:$0xff]  }
  0x14   : > { %1128 = vmatprep.subr.bf16.mxu0 %v1240_v1  ;;  %1190 = vmatprep.subr.bf16.mxu1 %v1240_v1  ;;  %v1230_v21 = vld [vmem:[%s1302_s26 + $0x30] sm:$0xff]  }
  0x17   : > { %1129 = vmatpush3.bf16.msra.mxu0 %v1216_v5  ;;  %1197 = vmatpush3.bf16.msra.mxu1 %v1216_v5 }
  0x18   : > { %1130 = vmatprep.subr.bf16.mxu0 %v1240_v1  ;;  %1191 = vmatprep.subr.bf16.mxu1 %v1240_v1 }
  0x1b   : > { %1131 = vmatpush3.bf16.msra.mxu0 %v1217_v7  ;;  %1198 = vmatpush3.bf16.msra.mxu1 %v1217_v7 }
  0x1c   : > { %1132 = vmatprep.subr.bf16.mxu0 %v1240_v1  ;;  %1192 = vmatprep.subr.bf16.mxu1 %v1240_v1 }
  0x1f   : > { %1133 = vmatpush3.bf16.msra.mxu0 %v360_v8  ;;  %1199 = vmatpush3.bf16.msra.mxu1 %v360_v8 }
  0x22   : > { %1135 = vmatmul.mubr.msk.bf16.vlgmr.msra.gmra.mrb[0].mxu0 %vm318_vm2, %v1219_v9  ;;  %1163 = vmatmul.mubr.msk.bf16.vlgmr.msra.gmra.mrb[0].mxu1 %vm318_vm2, %v1220_v10 }
  0x23   : > { %1138 = vmatprep.mubr.msk.bf16.mxu0 %vm1241_vm0, %v1240_v1  ;;  %1166 = vmatprep.mubr.msk.bf16.mxu1 %vm1241_vm0, %v1240_v1 }
  0x2a   : > { %1139 = vmatmul.mubr.msk.bf16.gmra.mrb[4].mxu0 %vm318_vm2, %v1221_v11  ;;  %1167 = vmatmul.mubr.msk.bf16.gmra.mrb[4].mxu1 %vm318_vm2, %v1222_v12 }
  0x2b   : > { %1142 = vmatprep.mubr.msk.bf16.mxu0 %vm1241_vm0, %v1240_v1  ;;  %1170 = vmatprep.mubr.msk.bf16.mxu1 %vm1241_vm0, %v1240_v1 }
  0x32   : > { %1143 = vmatmul.mubr.msk.bf16.gmra.mrb[8].mxu0 %vm318_vm2, %v1223_v13  ;;  %1171 = vmatmul.mubr.msk.bf16.gmra.mrb[8].mxu1 %vm318_vm2, %v1224_v14 }
  0x33   : > { %1146 = vmatprep.mubr.msk.bf16.mxu0 %vm1241_vm0, %v1240_v1  ;;  %1174 = vmatprep.mubr.msk.bf16.mxu1 %vm1241_vm0, %v1240_v1 }
  0x3a   : > { %1147 = vmatmul.mubr.msk.bf16.gmra.mrb[12].mxu0 %vm318_vm2, %v1225_v15  ;;  %1175 = vmatmul.mubr.msk.bf16.gmra.mrb[12].mxu1 %vm318_vm2, %v1226_v16 }
  0x3b   : > { %1150 = vmatprep.mubr.msk.bf16.mxu0 %vm1241_vm0, %v1240_v1  ;;  %1178 = vmatprep.mubr.msk.bf16.mxu1 %vm1241_vm0, %v1240_v1 }
  0x42   : > { %1151 = vmatmul.mubr.msk.bf16.gmra.mrb[16].mxu0 %vm318_vm2, %v1227_v17  ;;  %1179 = vmatmul.mubr.msk.bf16.gmra.mrb[16].mxu1 %vm318_vm2, %v1228_v18 }
  0x43   : > { %1154 = vmatprep.mubr.msk.bf16.mxu0 %vm1241_vm0, %v1240_v1  ;;  %1182 = vmatprep.mubr.msk.bf16.mxu1 %vm1241_vm0, %v1240_v1 }
  0x4a   : > { %1155 = vmatmul.mubr.msk.bf16.gmra.mrb[20].mxu0 %vm318_vm2, %v1229_v19  ;;  %1183 = vmatmul.mubr.msk.bf16.gmra.mrb[20].mxu1 %vm318_vm2, %v1231_v20 }
  0x4b   : > { %1158 = vmatprep.mubr.msk.bf16.mxu0 %vm1241_vm0, %v1240_v1 }
  0x52   : > { %1159 = vmatmul.mubr.msk.bf16.gmra.mrb[24].mxu0 %vm318_vm2, %v1230_v21 }
  0xf5   : > { %v1369_v22 = vpop.f32.mrb[0].mxu0  ;;  %v1371_v23 = vpop.f32.mrb[0].mxu1 }
  0xf6   : > { %v1164_v24 = vpop.f32.mrb[1].mxu1  ;;  %525 = vrot.lane.b32.xlu0 %v1369_v22, %s1242_s6  ;;  %v1136_v25 = vpop.f32.mrb[1].mxu0 }
  0xf7   : > { %v1375_v26 = vpop.f32.mrb[2].mxu0  ;;  %v1377_v27 = vpop.f32.mrb[2].mxu1 }
  0xf8   : > { %555 = vrot.lane.b32.xlu1 %v1377_v27, %s1242_s6  ;;  %v1137_v28 = vpop.f32.mrb[3].mxu0  ;;  %v1165_v29 = vpop.f32.mrb[3].mxu1 }
  0xfa   : > { %553 = vrot.lane.b32.xlu0 %v1371_v23, %s1242_s6 }
  0xfd   : > { %v1383_v30 = vpop.f32.mrb[4].mxu0  ;;  %v1385_v31 = vpop.f32.mrb[4].mxu1 }
  0xfe   : > { %527 = vrot.lane.b32.xlu0 %v1375_v26, %s1242_s6  ;;  %529 = vrot.lane.b32.xlu1 %v1383_v30, %s1242_s6  ;;  %v1140_v32 = vpop.f32.mrb[5].mxu0  ;;  %v1168_v33 = vpop.f32.mrb[5].mxu1 }
  0xff   : > { %v1391_v34 = vpop.f32.mrb[6].mxu0  ;;  %v1393_v35 = vpop.f32.mrb[6].mxu1 }
 0x100   : > { %v1141_v36 = vpop.f32.mrb[7].mxu0  ;;  %v1169_v37 = vpop.f32.mrb[7].mxu1 }
 0x102   : > { %557 = vrot.lane.b32.xlu0 %v1385_v31, %s1242_s6  ;;  %531 = vrot.lane.b32.xlu1 %v1391_v34, %s1242_s6 }
 0x105   : > { %v1399_v38 = vpop.f32.mrb[8].mxu0  ;;  %v1401_v39 = vpop.f32.mrb[8].mxu1 }
 0x106   : > { %559 = vrot.lane.b32.xlu1 %v1393_v35, %s1242_s6  ;;  %533 = vrot.lane.b32.xlu0 %v1399_v38, %s1242_s6  ;;  %v1144_v40 = vpop.f32.mrb[9].mxu0  ;;  %v1172_v41 = vpop.f32.mrb[9].mxu1 }
 0x107   : > { %v1407_v42 = vpop.f32.mrb[10].mxu0  ;;  %v1409_v43 = vpop.f32.mrb[10].mxu1 }
 0x108   : > { %v1145_v44 = vpop.f32.mrb[11].mxu0  ;;  %v1173_v45 = vpop.f32.mrb[11].mxu1 }
 0x10a   : > { %561 = vrot.lane.b32.xlu0 %v1401_v39, %s1242_s6  ;;  %535 = vrot.lane.b32.xlu1 %v1407_v42, %s1242_s6 }
 0x10d   : > { %v1415_v46 = vpop.f32.mrb[12].mxu0  ;;  %v1417_v47 = vpop.f32.mrb[12].mxu1 }
 0x10e   : > { %563 = vrot.lane.b32.xlu1 %v1409_v43, %s1242_s6  ;;  %537 = vrot.lane.b32.xlu0 %v1415_v46, %s1242_s6  ;;  %v1148_v48 = vpop.f32.mrb[13].mxu0  ;;  %v1176_v49 = vpop.f32.mrb[13].mxu1 }
 0x10f   : > { %v1423_v50 = vpop.f32.mrb[14].mxu0  ;;  %v1425_v51 = vpop.f32.mrb[14].mxu1 }
 0x110   : > { %v1149_v52 = vpop.f32.mrb[15].mxu0  ;;  %v1177_v53 = vpop.f32.mrb[15].mxu1 }
 0x112   : > { %565 = vrot.lane.b32.xlu0 %v1417_v47, %s1242_s6  ;;  %539 = vrot.lane.b32.xlu1 %v1423_v50, %s1242_s6 }
 0x115   : > { %v1431_v54 = vpop.f32.mrb[16].mxu0  ;;  %v1433_v55 = vpop.f32.mrb[16].mxu1 }
 0x116   : > { %567 = vrot.lane.b32.xlu1 %v1425_v51, %s1242_s6  ;;  %541 = vrot.lane.b32.xlu0 %v1431_v54, %s1242_s6  ;;  %v1152_v56 = vpop.f32.mrb[17].mxu0  ;;  %v1180_v57 = vpop.f32.mrb[17].mxu1 }
 0x117   : > { %v1439_v58 = vpop.f32.mrb[18].mxu0  ;;  %v1441_v59 = vpop.f32.mrb[18].mxu1 }
 0x118   : > { %v1153_v60 = vpop.f32.mrb[19].mxu0  ;;  %v1181_v61 = vpop.f32.mrb[19].mxu1 }
 0x11a   : > { %569 = vrot.lane.b32.xlu0 %v1433_v55, %s1242_s6  ;;  %543 = vrot.lane.b32.xlu1 %v1439_v58, %s1242_s6 }
 0x11d   : > { %v1447_v62 = vpop.f32.mrb[20].mxu0  ;;  %v1449_v63 = vpop.f32.mrb[20].mxu1 }
 0x11e   : > { %571 = vrot.lane.b32.xlu1 %v1441_v59, %s1242_s6  ;;  %545 = vrot.lane.b32.xlu0 %v1447_v62, %s1242_s6  ;;  %v1156_v0 = vpop.f32.mrb[21].mxu0  ;;  %v1184_v1 = vpop.f32.mrb[21].mxu1 }
 0x11f   : > { %v1455_v2 = vpop.f32.mrb[22].mxu0  ;;  %v1457_v3 = vpop.f32.mrb[22].mxu1 }
 0x120   : > { %v1157_v4 = vpop.f32.mrb[23].mxu0  ;;  %v1185_v5 = vpop.f32.mrb[23].mxu1 }
 0x122   : > { %547 = vrot.lane.b32.xlu1 %v1455_v2, %s1242_s6 }
 0x125   : > { %v1461_v6 = vpop.f32.mrb[24].mxu0 }
 0x126   : > { %549 = vrot.lane.b32.xlu0 %v1461_v6, %s1242_s6  ;;  %v1160_v7 = vpop.f32.mrb[25].mxu0 }
 0x127   : > { %v1465_v8 = vpop.f32.mrb[26].mxu0 }
 0x128   : > { %551 = vrot.lane.b32.xlu1 %v1465_v8, %s1242_s6  ;;  %v1161_v9 = vpop.f32.mrb[27].mxu0 }
 0x12a   : > { %573 = vrot.lane.b32.xlu0 %v1449_v63, %s1242_s6 }
 0x12c   : > { %575 = vrot.lane.b32.xlu1 %v1457_v3, %s1242_s6 }
 0x168   : > { %v526_v10 = vpop.permute.xlu0 %525 }
 0x169   : > { %v1474_v11 = vmax.f32 %v1369_v22, %v526_v10 }
 0x16a   : > { %v556_v12 = vpop.permute.xlu1 %555 }
 0x16b   : > { %655 = vrot.lane.b32.xlu0 %v1474_v11, %s1243_s7  ;;  %v1494_v21 = vmax.f32 %v1377_v27, %v556_v12 }
 0x16c   : > { %v554_v13 = vpop.permute.xlu0 %553 }
 0x16d   : > { %v1479_v14 = vmax.f32 %v1371_v23, %v554_v13 }
 0x16f   : > { %683 = vrot.lane.b32.xlu0 %v1479_v14, %s1243_s7 }
 0x170   : > { %v528_v15 = vpop.permute.xlu0 %527  ;;  %v530_v16 = vpop.permute.xlu1 %529 }
 0x171   : > { %v1484_v17 = vmax.f32 %v1375_v26, %v528_v15  ;;  %v1487_v18 = vmax.f32 %v1383_v30, %v530_v16 }
 0x173   : > { %659 = vrot.lane.b32.xlu0 %v1487_v18, %s1243_s7  ;;  %657 = vrot.lane.b32.xlu1 %v1484_v17, %s1243_s7 }
 0x174   : > { %v558_v19 = vpop.permute.xlu0 %557  ;;  %v532_v20 = vpop.permute.xlu1 %531 }
 0x175   : > { %v1497_v22 = vmax.f32 %v1385_v31, %v558_v19  ;;  %v1504_v25 = vmax.f32 %v1391_v34, %v532_v20 }
 0x177   : > { %687 = vrot.lane.b32.xlu0 %v1497_v22, %s1243_s7  ;;  %685 = vrot.lane.b32.xlu1 %v1494_v21, %s1243_s7 }
 0x178   : > { %v560_v23 = vpop.permute.xlu1 %559  ;;  %v534_v24 = vpop.permute.xlu0 %533 }
 0x179   : > { %v1507_v26 = vmax.f32 %v1399_v38, %v534_v24  ;;  %v1514_v29 = vmax.f32 %v1393_v35, %v560_v23 }
 0x17b   : > { %663 = vrot.lane.b32.xlu0 %v1507_v26, %s1243_s7  ;;  %661 = vrot.lane.b32.xlu1 %v1504_v25, %s1243_s7 }
 0x17c   : > { %v562_v27 = vpop.permute.xlu0 %561  ;;  %v536_v28 = vpop.permute.xlu1 %535 }
 0x17d   : > { %v1517_v30 = vmax.f32 %v1401_v39, %v562_v27  ;;  %v1524_v33 = vmax.f32 %v1407_v42, %v536_v28 }
 0x17f   : > { %691 = vrot.lane.b32.xlu0 %v1517_v30, %s1243_s7  ;;  %689 = vrot.lane.b32.xlu1 %v1514_v29, %s1243_s7 }
 0x180   : > { %v564_v31 = vpop.permute.xlu1 %563  ;;  %v538_v32 = vpop.permute.xlu0 %537 }
 0x181   : > { %v1527_v34 = vmax.f32 %v1415_v46, %v538_v32  ;;  %v1534_v37 = vmax.f32 %v1409_v43, %v564_v31 }
 0x183   : > { %667 = vrot.lane.b32.xlu0 %v1527_v34, %s1243_s7  ;;  %665 = vrot.lane.b32.xlu1 %v1524_v33, %s1243_s7 }
 0x184   : > { %v566_v35 = vpop.permute.xlu0 %565  ;;  %v540_v36 = vpop.permute.xlu1 %539 }
 0x185   : > { %v1537_v38 = vmax.f32 %v1417_v47, %v566_v35  ;;  %v1544_v41 = vmax.f32 %v1423_v50, %v540_v36 }
 0x187   : > { %695 = vrot.lane.b32.xlu0 %v1537_v38, %s1243_s7  ;;  %693 = vrot.lane.b32.xlu1 %v1534_v37, %s1243_s7 }
 0x188   : > { %v568_v39 = vpop.permute.xlu1 %567  ;;  %v542_v40 = vpop.permute.xlu0 %541 }
 0x189   : > { %v1547_v42 = vmax.f32 %v1431_v54, %v542_v40  ;;  %v1554_v45 = vmax.f32 %v1425_v51, %v568_v39 }
 0x18b   : > { %671 = vrot.lane.b32.xlu0 %v1547_v42, %s1243_s7  ;;  %669 = vrot.lane.b32.xlu1 %v1544_v41, %s1243_s7 }
 0x18c   : > { %v570_v43 = vpop.permute.xlu0 %569  ;;  %v544_v44 = vpop.permute.xlu1 %543 }
 0x18d   : > { %v1557_v46 = vmax.f32 %v1433_v55, %v570_v43  ;;  %v1564_v49 = vmax.f32 %v1439_v58, %v544_v44 }
 0x18f   : > { %699 = vrot.lane.b32.xlu0 %v1557_v46, %s1243_s7  ;;  %697 = vrot.lane.b32.xlu1 %v1554_v45, %s1243_s7 }
 0x190   : > { %v572_v47 = vpop.permute.xlu1 %571  ;;  %v546_v48 = vpop.permute.xlu0 %545 }
 0x191   : > { %v1567_v50 = vmax.f32 %v1447_v62, %v546_v48  ;;  %v1574_v51 = vmax.f32 %v1441_v59, %v572_v47  ;;  %v1606_v62 = vld [vmem:[%s1724_s2] ss:$0 sm:$0xff] }
 0x193   : > { %675 = vrot.lane.b32.xlu0 %v1567_v50, %s1243_s7  ;;  %673 = vrot.lane.b32.xlu1 %v1564_v49, %s1243_s7 }
 0x194   : > { %v548_v52 = vpop.permute.xlu1 %547 }
 0x195   : > { %v1579_v54 = vmax.f32 %v1455_v2, %v548_v52 }
 0x197   : > { %701 = vrot.lane.b32.xlu1 %v1574_v51, %s1243_s7 }
 0x198   : > { %v550_v53 = vpop.permute.xlu0 %549 }
 0x199   : > { %v1582_v55 = vmax.f32 %v1461_v6, %v550_v53 }
 0x19a   : > { %v552_v56 = vpop.permute.xlu1 %551 }
 0x19b   : > { %679 = vrot.lane.b32.xlu0 %v1582_v55, %s1243_s7  ;;  %677 = vrot.lane.b32.xlu1 %v1579_v54, %s1243_s7  ;;  %v1589_v58 = vmax.f32 %v1465_v8, %v552_v56 }
 0x19c   : > { %v574_v57 = vpop.permute.xlu0 %573 }
 0x19d   : > { %v1592_v59 = vmax.f32 %v1449_v63, %v574_v57 }
 0x19e   : > { %v576_v60 = vpop.permute.xlu1 %575 }
 0x19f   : > { %703 = vrot.lane.b32.xlu0 %v1592_v59, %s1243_s7  ;;  %681 = vrot.lane.b32.xlu1 %v1589_v58, %s1243_s7  ;;  %v1599_v61 = vmax.f32 %v1457_v3, %v576_v60 }
 0x1a3   : > { %705 = vrot.lane.b32.xlu1 %v1599_v61, %s1243_s7 }
 0x1dd   : > { %v656_v63 = vpop.permute.xlu0 %655 }
 0x1de   : > { %v733_v0 = vmax.f32 %v1474_v11, %v656_v63 }
 0x1e0   : > { %v766_v1 = vadd.f32 %v1606_v62, %v733_v0 }
 0x1e1   : > { %v684_v2 = vpop.permute.xlu0 %683 }
 0x1e2   : > { %v792_v4 = vmax.f32 %v766_v1, 0.0  ;;  %v747_v5 = vmax.f32 %v1479_v14, %v684_v2 }
 0x1e4   : > { %v1074_v3 = vpack.c.bf16 %v792_v4, %v792_v4  ;;  %v780_v6 = vadd.f32 %v1606_v62, %v747_v5 }
 0x1e5   : > { %v660_v7 = vpop.permute.xlu0 %659  ;;  %v658_v8 = vpop.permute.xlu1 %657 }
 0x1e6   : > { %923 = vst.msk [vmem:[%s1616_s13] sm:$0xf] %vm922_vm3, %v1074_v3  ;;  %v806_v9 = vmax.f32 %v780_v6, 0.0  ;;  %v735_v10 = vmax.f32 %v1487_v18, %v660_v7  ;;  %v734_v11 = vmax.f32 %v1484_v17, %v658_v8 }
 0x1e8   : > { %v1088_v12 = vpack.c.bf16 %v806_v9, %v806_v9  ;;  %v768_v13 = vadd.f32 %v1606_v62, %v735_v10  ;;  %v767_v14 = vadd.f32 %v1606_v62, %v734_v11 }
 0x1e9   : > { %v688_v15 = vpop.permute.xlu0 %687  ;;  %v686_v16 = vpop.permute.xlu1 %685 }
 0x1ea   : > { %937 = vst.msk [vmem:[%s1616_s13 + $0x38] sm:$0xf] %vm922_vm3, %v1088_v12  ;;  %v794_v19 = vmax.f32 %v768_v13, 0.0  ;;  %v793_v20 = vmax.f32 %v767_v14, 0.0  ;;  %v749_v23 = vmax.f32 %v1497_v22, %v688_v15  ;;  %v748_v24 = vmax.f32 %v1494_v21, %v686_v16 }
 0x1ec   : > { %v1076_v18 = vpack.c.bf16 %v794_v19, %v794_v19  ;;  %v1075_v27 = vpack.c.bf16 %v793_v20, %v793_v20  ;;  %v782_v17 = vadd.f32 %v1606_v62, %v749_v23  ;;  %v781_v28 = vadd.f32 %v1606_v62, %v748_v24 }
 0x1ed   : > { %v664_v31 = vpop.permute.xlu0 %663  ;;  %v662_v32 = vpop.permute.xlu1 %661 }
 0x1ee   : > { %925 = vst.msk [vmem:[%s1616_s13 + $0x8] sm:$0xf] %vm922_vm3, %v1076_v18  ;;  %924 = vst.msk [vmem:[%s1616_s13 + $0x4] sm:$0xf] %vm922_vm3, %v1075_v27  ;;  %v808_v35 = vmax.f32 %v782_v17, 0.0  ;;  %v807_v36 = vmax.f32 %v781_v28, 0.0  ;;  %v737_v22 = vmax.f32 %v1507_v26, %v664_v31  ;;  %v736_v21 = vmax.f32 %v1504_v25, %v662_v32 }
 0x1f0   : > { %v1090_v39 = vpack.c.bf16 %v808_v35, %v808_v35  ;;  %v1089_v40 = vpack.c.bf16 %v807_v36, %v807_v36  ;;  %v770_v43 = vadd.f32 %v1606_v62, %v737_v22  ;;  %v769_v44 = vadd.f32 %v1606_v62, %v736_v21 }
 0x1f1   : > { %v692_v47 = vpop.permute.xlu0 %691  ;;  %v690_v48 = vpop.permute.xlu1 %689 }
 0x1f2   : > { %939 = vst.msk [vmem:[%s1616_s13 + $0x40] sm:$0xf] %vm922_vm3, %v1090_v39  ;;  %938 = vst.msk [vmem:[%s1616_s13 + $0x3c] sm:$0xf] %vm922_vm3, %v1089_v40  ;;  %v796_v52 = vmax.f32 %v770_v43, 0.0  ;;  %v795_v53 = vmax.f32 %v769_v44, 0.0  ;;  %v751_v26 = vmax.f32 %v1517_v30, %v692_v47  ;;  %v750_v25 = vmax.f32 %v1514_v29, %v690_v48 }
 0x1f4   : > { %v1078_v56 = vpack.c.bf16 %v796_v52, %v796_v52  ;;  %v1077_v57 = vpack.c.bf16 %v795_v53, %v795_v53  ;;  %v784_v60 = vadd.f32 %v1606_v62, %v751_v26  ;;  %v783_v63 = vadd.f32 %v1606_v62, %v750_v25 }
 0x1f5   : > { %v668_v0 = vpop.permute.xlu0 %667  ;;  %v666_v1 = vpop.permute.xlu1 %665 }
 0x1f6   : > { %927 = vst.msk [vmem:[%s1616_s13 + $0x10] sm:$0xf] %vm922_vm3, %v1078_v56  ;;  %926 = vst.msk [vmem:[%s1616_s13 + $0xc] sm:$0xf] %vm922_vm3, %v1077_v57  ;;  %v810_v2 = vmax.f32 %v784_v60, 0.0  ;;  %v809_v4 = vmax.f32 %v783_v63, 0.0  ;;  %v739_v30 = vmax.f32 %v1527_v34, %v668_v0  ;;  %v738_v29 = vmax.f32 %v1524_v33, %v666_v1 }
 0x1f8   : > { %v1092_v5 = vpack.c.bf16 %v810_v2, %v810_v2  ;;  %v1091_v3 = vpack.c.bf16 %v809_v4, %v809_v4  ;;  %v772_v6 = vadd.f32 %v1606_v62, %v739_v30  ;;  %v771_v7 = vadd.f32 %v1606_v62, %v738_v29 }
 0x1f9   : > { %v696_v8 = vpop.permute.xlu0 %695  ;;  %v694_v9 = vpop.permute.xlu1 %693 }
 0x1fa   : > { %941 = vst.msk [vmem:[%s1616_s13 + $0x48] sm:$0xf] %vm922_vm3, %v1092_v5  ;;  %940 = vst.msk [vmem:[%s1616_s13 + $0x44] sm:$0xf] %vm922_vm3, %v1091_v3  ;;  %v798_v10 = vmax.f32 %v772_v6, 0.0  ;;  %v797_v11 = vmax.f32 %v771_v7, 0.0  ;;  %v753_v34 = vmax.f32 %v1537_v38, %v696_v8  ;;  %v752_v33 = vmax.f32 %v1534_v37, %v694_v9 }
 0x1fc   : > { %v1080_v12 = vpack.c.bf16 %v798_v10, %v798_v10  ;;  %v1079_v13 = vpack.c.bf16 %v797_v11, %v797_v11  ;;  %v786_v14 = vadd.f32 %v1606_v62, %v753_v34  ;;  %v785_v15 = vadd.f32 %v1606_v62, %v752_v33 }
 0x1fd   : > { %v672_v16 = vpop.permute.xlu0 %671  ;;  %v670_v19 = vpop.permute.xlu1 %669 }
 0x1fe   : > { %929 = vst.msk [vmem:[%s1616_s13 + $0x18] sm:$0xf] %vm922_vm3, %v1080_v12  ;;  %928 = vst.msk [vmem:[%s1616_s13 + $0x14] sm:$0xf] %vm922_vm3, %v1079_v13  ;;  %v812_v20 = vmax.f32 %v786_v14, 0.0  ;;  %v811_v23 = vmax.f32 %v785_v15, 0.0  ;;  %v741_v38 = vmax.f32 %v1547_v42, %v672_v16  ;;  %v740_v37 = vmax.f32 %v1544_v41, %v670_v19 }
 0x200   : > { %v1094_v24 = vpack.c.bf16 %v812_v20, %v812_v20  ;;  %v1093_v18 = vpack.c.bf16 %v811_v23, %v811_v23  ;;  %v774_v27 = vadd.f32 %v1606_v62, %v741_v38  ;;  %v773_v17 = vadd.f32 %v1606_v62, %v740_v37 }
 0x201   : > { %v700_v28 = vpop.permute.xlu0 %699  ;;  %v698_v31 = vpop.permute.xlu1 %697 }
 0x202   : > { %943 = vst.msk [vmem:[%s1616_s13 + $0x50] sm:$0xf] %vm922_vm3, %v1094_v24  ;;  %942 = vst.msk [vmem:[%s1616_s13 + $0x4c] sm:$0xf] %vm922_vm3, %v1093_v18  ;;  %v800_v32 = vmax.f32 %v774_v27, 0.0  ;;  %v799_v35 = vmax.f32 %v773_v17, 0.0  ;;  %v755_v42 = vmax.f32 %v1557_v46, %v700_v28  ;;  %v754_v41 = vmax.f32 %v1554_v45, %v698_v31 }
 0x204   : > { %v1082_v36 = vpack.c.bf16 %v800_v32, %v800_v32  ;;  %v1081_v22 = vpack.c.bf16 %v799_v35, %v799_v35  ;;  %v788_v21 = vadd.f32 %v1606_v62, %v755_v42  ;;  %v787_v39 = vadd.f32 %v1606_v62, %v754_v41 }
 0x205   : > { %v676_v40 = vpop.permute.xlu0 %675  ;;  %v674_v43 = vpop.permute.xlu1 %673 }
 0x206   : > { %931 = vst.msk [vmem:[%s1616_s13 + $0x20] sm:$0xf] %vm922_vm3, %v1082_v36  ;;  %930 = vst.msk [vmem:[%s1616_s13 + $0x1c] sm:$0xf] %vm922_vm3, %v1081_v22  ;;  %v814_v44 = vmax.f32 %v788_v21, 0.0  ;;  %v813_v47 = vmax.f32 %v787_v39, 0.0  ;;  %v743_v46 = vmax.f32 %v1567_v50, %v676_v40  ;;  %v742_v45 = vmax.f32 %v1564_v49, %v674_v43 }
 0x208   : > { %v1096_v48 = vpack.c.bf16 %v814_v44, %v814_v44  ;;  %v1095_v52 = vpack.c.bf16 %v813_v47, %v813_v47  ;;  %v776_v53 = vadd.f32 %v1606_v62, %v743_v46  ;;  %v775_v26 = vadd.f32 %v1606_v62, %v742_v45 }
 0x209   : > { %v702_v25 = vpop.permute.xlu1 %701 }
 0x20a   : > { %945 = vst.msk [vmem:[%s1616_s13 + $0x58] sm:$0xf] %vm922_vm3, %v1096_v48  ;;  %944 = vst.msk [vmem:[%s1616_s13 + $0x54] sm:$0xf] %vm922_vm3, %v1095_v52  ;;  %v802_v56 = vmax.f32 %v776_v53, 0.0  ;;  %v801_v57 = vmax.f32 %v775_v26, 0.0  ;;  %v756_v60 = vmax.f32 %v1574_v51, %v702_v25 }
 0x20c   : > { %v1084_v50 = vpack.c.bf16 %v802_v56, %v802_v56  ;;  %v1083_v49 = vpack.c.bf16 %v801_v57, %v801_v57  ;;  %v789_v63 = vadd.f32 %v1606_v62, %v756_v60 }
 0x20d   : > { %v680_v0 = vpop.permute.xlu0 %679  ;;  %v678_v1 = vpop.permute.xlu1 %677 }
 0x20e   : > { %933 = vst.msk [vmem:[%s1616_s13 + $0x28] sm:$0xf] %vm922_vm3, %v1084_v50  ;;  %932 = vst.msk [vmem:[%s1616_s13 + $0x24] sm:$0xf] %vm922_vm3, %v1083_v49  ;;  %v815_v2 = vmax.f32 %v789_v63, 0.0  ;;  %v745_v4 = vmax.f32 %v1582_v55, %v680_v0  ;;  %v744_v30 = vmax.f32 %v1579_v54, %v678_v1 }
 0x210   : > { %v1097_v29 = vpack.c.bf16 %v815_v2, %v815_v2  ;;  %v778_v51 = vadd.f32 %v1606_v62, %v745_v4  ;;  %v777_v5 = vadd.f32 %v1606_v62, %v744_v30 }
 0x211   : > { %v704_v3 = vpop.permute.xlu0 %703  ;;  %v682_v6 = vpop.permute.xlu1 %681 }
 0x212   : > { %946 = vst.msk [vmem:[%s1616_s13 + $0x5c] sm:$0xf] %vm922_vm3, %v1097_v29  ;;  %v804_v7 = vmax.f32 %v778_v51, 0.0  ;;  %v803_v8 = vmax.f32 %v777_v5, 0.0  ;;  %v757_v9 = vmax.f32 %v1592_v59, %v704_v3  ;;  %v746_v55 = vmax.f32 %v1589_v58, %v682_v6 }
 0x214   : > { %v1086_v54 = vpack.c.bf16 %v804_v7, %v804_v7  ;;  %v1085_v10 = vpack.c.bf16 %v803_v8, %v803_v8  ;;  %v790_v11 = vadd.f32 %v1606_v62, %v757_v9  ;;  %v779_v34 = vadd.f32 %v1606_v62, %v746_v55 }
 0x215   : > { %v706_v33 = vpop.permute.xlu1 %705 }
 0x216   : > { %935 = vst.msk [vmem:[%s1616_s13 + $0x30] sm:$0xf] %vm922_vm3, %v1086_v54  ;;  %934 = vst.msk [vmem:[%s1616_s13 + $0x2c] sm:$0xf] %vm922_vm3, %v1085_v10  ;;  %v816_v12 = vmax.f32 %v790_v11, 0.0  ;;  %v805_v13 = vmax.f32 %v779_v34, 0.0  ;;  %v758_v14 = vmax.f32 %v1599_v61, %v706_v33 }
 0x218   : > { %v1098_v59 = vpack.c.bf16 %v816_v12, %v816_v12  ;;  %v1087_v15 = vpack.c.bf16 %v805_v13, %v805_v13  ;;  %v791_v58 = vadd.f32 %v1606_v62, %v758_v14 }
 0x21a   : > { %947 = vst.msk [vmem:[%s1616_s13 + $0x60] sm:$0xf] %vm922_vm3, %v1098_v59  ;;  %936 = vst.msk [vmem:[%s1616_s13 + $0x34] sm:$0xf] %vm922_vm3, %v1087_v15  ;;  %v817_v16 = vmax.f32 %v791_v58, 0.0 }
 0x21c   : > { %v1099_v19 = vpack.c.bf16 %v817_v16, %v817_v16 }
 0x21e   : > { %948 = vst.msk [vmem:[%s1616_s13 + $0x64] sm:$0xf] %vm922_vm3, %v1099_v19 }
 0x21f PF: > { %s13_s12 = sadd.s32 1, %s1238_s12  }
 0x220   : > { %p10_p4 = scmp.ge.s32.totalorder %s13_s12, 4  }
 0x222   :  { %12 = sbr.rel (!%p10_p4) target bundleno = 1 (0x1), region = 62 }

// kernel: forward.4
= control target key start
LH: loop header
LB: loop body
LE: loop exit
PB: predicated region body
PF: predicated region fallthrough
CT: control target
= control target key end

     0   :  { %s1292_s12 = smov 0   ;;  %s1488_s0 = inlined_call_operand.vmem [shape: bf16[64,800], index: 0, kind: input, shape index: {}]   ;;  %s1489_s1 = inlined_call_operand.vmem [shape: bf16[800,64], index: 1, kind: input, shape index: {}]   ;;  %s1490_s2 = inlined_call_operand.vmem [shape: f32[1,16], index: 2, kind: input, shape index: {}]   ;;  %s1491_s3 = inlined_call_operand.vmem [shape: bf16[64,16], index: 3, kind: output, shape index: {}]  }
   0x1 LB: > { %s999_s13 = sadd.s32 4294967295, %s1268_s12   ;;  %p1003_p0 = scmp.ge.s32.totalorder %s1268_s12, 1  ;;  %s1268_s12 = sphi %s1292_s12, %s13_s12  }
   0x2   : > { %p139_p1 = scmp.lt.s32.totalorder %s1268_s12, 3 }
   0x4   : > { %p140_p2 = pnand %p1003_p0, %p139_p1 }
   0x5   : > { %v1192_v0 = vld [vmem:[%s1489_s1 + $0x40] sm:$0xff] (!%p140_p2)   ;;  %v1196_v4 = vld [vmem:[%s1489_s1 + $0x48] sm:$0xff] (!%p140_p2)   ;;  %v1200_v8 = vld [vmem:[%s1489_s1 + $0x50] sm:$0xff] (!%p140_p2)   ;;  %s1004_s19 = sshll.u32 (!%p140_p2), %s999_s13, 2  ;;  %vm664_vm0 = vcmask (!%p140_p2), 261120   ;;  %s1271_s20 = smov (!%p140_p2), 96  }
   0x6   : > { %143 = sbr.rel (%p140_p2) target bundleno = 543 (0x21f), region = 32  ;;  %v1193_v1 = vld [vmem:[%s1489_s1 + $0xc0] sm:$0xff] (!%p140_p2)   ;;  %1085 = vmatprep.subr.bf16.mxu0 (!%p140_p2), %v1192_v0  ;;  %v1197_v5 = vld [vmem:[%s1489_s1 + $0xc8] sm:$0xff] (!%p140_p2)   ;;  %v1201_v9 = vld [vmem:[%s1489_s1 + $0xd0] sm:$0xff] (!%p140_p2)   ;;  %p165_p3 = scmp.lt.s32.totalorder (!%p140_p2), %s1004_s19, 7  ;;  %vm938_vm1 = vcmask (!%p140_p2), 125952  }
   0x7   : > { %v1194_v2 = vld [vmem:[%s1489_s1] sm:$0xff] (!%p140_p2)   ;;  %1113 = vmatprep.subr.bf16.mxu1 (!%p140_p2), %v1193_v1  ;;  %v1198_v6 = vld [vmem:[%s1489_s1 + $0x8] sm:$0xff] (!%p140_p2)   ;;  %v1202_v10 = vld [vmem:[%s1489_s1 + $0x10] sm:$0xff] (!%p140_p2)  }
   0x8   : > { %v1195_v3 = vld [vmem:[%s1489_s1 + $0x80] sm:$0xff] (!%p140_p2)   ;;  %1086 = vmatpush3.bf16.msra.mxu0 (!%p140_p2), %v1194_v2  ;;  %v1199_v7 = vld [vmem:[%s1489_s1 + $0x88] sm:$0xff] (!%p140_p2)   ;;  %v1203_v11 = vld [vmem:[%s1489_s1 + $0x90] sm:$0xff] (!%p140_p2)  }
   0x9   : > { %1114 = vmatpush3.bf16.msra.mxu1 (!%p140_p2), %v1195_v3  ;;  %1087 = vmatprep.subr.bf16.mxu0 (!%p140_p2), %v1196_v4  ;;  %v1204_v12 = vld [vmem:[%s1489_s1 + $0x58] sm:$0xff] (!%p140_p2)   ;;  %v1208_v16 = vld [vmem:[%s1489_s1 + $0x60] sm:$0xff] (!%p140_p2)   ;;  %v1212_v20 = vld [vmem:[%s1489_s1 + $0x68] sm:$0xff] (!%p140_p2)  }
   0xa   : > { %1115 = vmatprep.subr.bf16.mxu1 (!%p140_p2), %v1197_v5  ;;  %v1205_v13 = vld [vmem:[%s1489_s1 + $0xd8] sm:$0xff] (!%p140_p2)   ;;  %v1209_v17 = vld [vmem:[%s1489_s1 + $0xe0] sm:$0xff] (!%p140_p2)   ;;  %v1213_v21 = vld [vmem:[%s1489_s1 + $0xe8] sm:$0xff] (!%p140_p2)  }
   0xb   : > { %v1206_v14 = vld [vmem:[%s1489_s1 + $0x18] sm:$0xff] (!%p140_p2)   ;;  %v1210_v18 = vld [vmem:[%s1489_s1 + $0x20] sm:$0xff] (!%p140_p2)   ;;  %v1214_v22 = vld [vmem:[%s1489_s1 + $0x28] sm:$0xff] (!%p140_p2)  }
   0xc   : > { %1088 = vmatpush3.bf16.msra.mxu0 (!%p140_p2), %v1198_v6  ;;  %v1207_v15 = vld [vmem:[%s1489_s1 + $0x98] sm:$0xff] (!%p140_p2)   ;;  %v1211_v19 = vld [vmem:[%s1489_s1 + $0xa0] sm:$0xff] (!%p140_p2)   ;;  %v1215_v23 = vld [vmem:[%s1489_s1 + $0xa8] sm:$0xff] (!%p140_p2)  }
   0xd   : > { %1116 = vmatpush3.bf16.msra.mxu1 %v1199_v7  ;;  %1089 = vmatprep.subr.bf16.mxu0 %v1200_v8  ;;  %s1493_s19 = smov (!%p165_p3, %s1004_s19), 7  ;;  %v1216_v24 = vld [vmem:[%s1489_s1 + $0x70] sm:$0xff]   ;;  %v1220_v28 = vld [vmem:[%s1489_s1 + $0x78] sm:$0xff]   ;;  %v1230_v36 = vld [vmem:[%s1489_s1 + $0x140] sm:$0xff]  }
   0xe   : > { %1117 = vmatprep.subr.bf16.mxu1 %v1201_v9  ;;  %v1217_v25 = vld [vmem:[%s1489_s1 + $0xf0] sm:$0xff]   ;;  %s1181_s16 = smul.u32 28, %s1493_s19  ;;  %v1221_v29 = vld [vmem:[%s1489_s1 + $0xf8] sm:$0xff]   ;;  %v1231_v37 = vld [vmem:[%s1489_s1 + $0x100] sm:$0xff]   ;;  %s1007_s23 = sshll.u32 %s1493_s19, 2 }
   0xf   : > { %v1218_v26 = vld [vmem:[%s1489_s1 + $0x30] sm:$0xff]   ;;  %v1222_v30 = vld [vmem:[%s1489_s1 + $0x38] sm:$0xff]   ;;  %v1232_v38 = vld [vmem:[%s1489_s1 + $0x148] sm:$0xff]   ;;  %s175_s26 = scalar_lea.vmem %s1491_s3, %s1007_s23 }
  0x10   : > { %1090 = vmatpush3.bf16.msra.mxu0 %v1202_v10  ;;  %v1219_v27 = vld [vmem:[%s1489_s1 + $0xb0] sm:$0xff]   ;;  %s1398_s13 = scalar_lea.vmem %s1488_s0, %s1181_s16  ;;  %v1223_v31 = vld [vmem:[%s1489_s1 + $0xb8] sm:$0xff]   ;;  %v1233_v39 = vld [vmem:[%s1489_s1 + $0x108] sm:$0xff]  }
  0x11   : > { %1118 = vmatpush3.bf16.msra.mxu1 %v1203_v11  ;;  %1091 = vmatprep.subr.bf16.mxu0 %v1204_v12  ;;  %v1224_v32 = vld [vmem:[%s1398_s13] ss:$28 sps:$4 sm:$0xff]   ;;  %v1227_v34 = vld [vmem:[%s1398_s13 + $0x8] ss:$28 sps:$4 sm:$0xff]   ;;  %v1234_v40 = vld [vmem:[%s1489_s1 + $0x150] sm:$0xff]  }
  0x12   : > { %1119 = vmatprep.subr.bf16.mxu1 %v1205_v13  ;;  %v1226_v33 = vld [vmem:[%s1398_s13 + $0x4] ss:$28 sps:$4 sm:$0xff]   ;;  %v1229_v35 = vld [vmem:[%s1398_s13 + $0xc] ss:$28 sps:$4 sm:$0xff]   ;;  %v1235_v41 = vld [vmem:[%s1489_s1 + $0x110] sm:$0xff]  }
  0x13   : > { %703 = vmatprep.mubr.bf16.mxu0 %v1226_v33  ;;  %752 = vmatprep.mubr.bf16.mxu1 %v1229_v35  ;;  %v1236_v42 = vld [vmem:[%s1489_s1 + $0x158] sm:$0xff]   ;;  %v1242_v45 = vld [vmem:[%s1398_s13 + $0x44] ss:$28 sps:$4 sm:$0xff]   ;;  %v1244_v51 = vld [vmem:[%s1489_s1 + $0x168] sm:$0xff]  }
  0x14   : > { %1092 = vmatpush3.bf16.msra.mxu0 %v1206_v14  ;;  %v1237_v43 = vld [vmem:[%s1489_s1 + $0x118] sm:$0xff]   ;;  %v1238_v46 = vld [vmem:[%s1489_s1 + $0x160] sm:$0xff]   ;;  %v1247_v52 = vld [vmem:[%s1489_s1 + $0x128] sm:$0xff]  }
  0x15   : > { %1120 = vmatpush3.bf16.msra.mxu1 %v1207_v15  ;;  %1093 = vmatprep.subr.bf16.mxu0 %v1208_v16  ;;  %v1240_v44 = vld [vmem:[%s1398_s13 + $0x3c] ss:$28 sps:$4 sm:$0xff]   ;;  %v1239_v49 = vld [vmem:[%s1489_s1 + $0x120] sm:$0xff]   ;;  %v1249_v53 = vld [vmem:[%s1489_s1 + $0x170] sm:$0xff]  }
  0x16   : > { %1121 = vmatprep.subr.bf16.mxu1 %v1209_v17  ;;  %v1245_v47 = vld [vmem:[%s1398_s13 + $0x38] ss:$28 sps:$4 sm:$0xff]   ;;  %v1246_v48 = vld [vmem:[%s1398_s13 + $0x40] ss:$28 sps:$4 sm:$0xff]   ;;  %v1256_v56 = vld [vmem:[%s1489_s1 + $0x188] sm:$0xff]  }
  0x17   : > { %v1248_v50 = vld [vmem:[%s1489_s1 + $0x180] sm:$0xff]   ;;  %v1255_v54 = vld [vmem:[%s1398_s13 + $0x14] ss:$28 sps:$4 sm:$0xff]   ;;  %v1251_v59 = vld [vmem:[%s1489_s1 + $0x178] sm:$0xff]  }
  0x18   : > { %1094 = vmatpush3.bf16.msra.mxu0 %v1210_v18  ;;  %v1250_v55 = vld [vmem:[%s1489_s1 + $0x130] sm:$0xff]   ;;  %v1252_v60 = vld [vmem:[%s1489_s1 + $0x138] sm:$0xff]   ;;  %v1259_v62 = vld [vmem:[%s1398_s13 + $0x4c] ss:$28 sps:$4 sm:$0xff]  }
  0x19   : > { %1122 = vmatpush3.bf16.msra.mxu1 %v1211_v19  ;;  %1095 = vmatprep.subr.bf16.mxu0 %v1212_v20  ;;  %v1257_v57 = vld [vmem:[%s1398_s13 + $0x18] ss:$28 sps:$4 sm:$0xff]   ;;  %v1258_v58 = vld [vmem:[%s1398_s13 + $0x50] ss:$28 sps:$4 sm:$0xff]   ;;  %v1261_v63 = vld [vmem:[%s1398_s13 + $0x48] ss:$28 sps:$4 sm:$0xff]  }
  0x1a   : > { %1123 = vmatprep.subr.bf16.mxu1 %v1213_v21  ;;  %v1253_v61 = vld [vmem:[%s1398_s13 + $0x10] ss:$28 sps:$4 sm:$0xff]   ;;  %s1270_s13 = smov 112  }
  0x1c   : > { %1096 = vmatpush3.bf16.msra.mxu0 %v1214_v22 }
  0x1d   : > { %1124 = vmatpush3.bf16.msra.mxu1 %v1215_v23  ;;  %1097 = vmatprep.subr.bf16.mxu0 %v1216_v24 }
  0x1e   : > { %1125 = vmatprep.subr.bf16.mxu1 %v1217_v25 }
  0x20   : > { %1098 = vmatpush3.bf16.msra.mxu0 %v1218_v26 }
  0x21   : > { %1126 = vmatpush3.bf16.msra.mxu1 %v1219_v27  ;;  %1099 = vmatprep.subr.bf16.mxu0 %v1220_v28 }
  0x22   : > { %1127 = vmatprep.subr.bf16.mxu1 %v1221_v29 }
  0x24   : > { %1100 = vmatpush3.bf16.msra.mxu0 %v1222_v30 }
  0x25   : > { %1128 = vmatpush3.bf16.msra.mxu1 %v1223_v31  ;;  %1141 = vmatprep.subr.bf16.mxu0 %v1230_v36 }
  0x26   : > { %1173 = vmatprep.subr.bf16.mxu1 %v1248_v50 }
  0x27   : > { %704 = vmatmul.mubr.bf16.vlgmr.msra.gmra.mrb[0].mxu0 %v1224_v32 }
  0x28   : > { %753 = vmatmul.mubr.bf16.vlgmr.msra.gmra.mrb[0].mxu1 %v1227_v34  ;;  %1142 = vmatpush3.bf16.msra.mxu0 %v1231_v37 }
  0x29   : > { %1143 = vmatprep.subr.bf16.mxu0 %v1232_v38  ;;  %711 = vmatprep.mubr.bf16.mxu0 %v1240_v44 }
  0x2a   : > { %760 = vmatprep.mubr.bf16.mxu1 %v1242_v45  ;;  %1174 = vmatpush3.bf16.msra.mxu1 %v1248_v50 }
  0x2b   : > { %1175 = vmatprep.subr.bf16.mxu1 %v1256_v56 }
  0x2c   : > { %1144 = vmatpush3.bf16.msra.mxu0 %v1233_v39 }
  0x2d   : > { %1145 = vmatprep.subr.bf16.mxu0 %v1234_v40 }
  0x2e   : > { %1176 = vmatpush3.bf16.msra.mxu1 %v1256_v56 }
  0x2f   : > { %712 = vmatmul.mubr.bf16.gmra.mrb[4].mxu0 %v1245_v47 }
  0x30   : > { %1146 = vmatpush3.bf16.msra.mxu0 %v1235_v41  ;;  %761 = vmatmul.mubr.bf16.gmra.mrb[4].mxu1 %v1246_v48 }
  0x31   : > { %1147 = vmatprep.subr.bf16.mxu0 %v1236_v42  ;;  %801 = vmatprep.mubr.bf16.mxu0 %v1255_v54 }
  0x32   : > { %1177 = vmatprep.mubr.msk.bf16.mxu1 %vm664_vm0, %v1257_v57 }
  0x34   : > { %1148 = vmatpush3.bf16.msra.mxu0 %v1237_v43 }
  0x35   : > { %1149 = vmatprep.subr.bf16.mxu0 %v1238_v46 }
  0x38   : > { %1150 = vmatpush3.bf16.msra.mxu0 %v1239_v49  ;;  %1178 = vmatmul.mubr.msk.bf16.vlgmr.msra.gmra.mrb[8].mxu1 %vm664_vm0, %v1258_v58 }
  0x39   : > { %1151 = vmatprep.subr.bf16.mxu0 %v1244_v51 }
  0x3c   : > { %1152 = vmatpush3.bf16.msra.mxu0 %v1247_v52 }
  0x3d   : > { %1153 = vmatprep.subr.bf16.mxu0 %v1249_v53 }
  0x40   : > { %1154 = vmatpush3.bf16.msra.mxu0 %v1250_v55 }
  0x41   : > { %1155 = vmatprep.subr.bf16.mxu0 %v1251_v59 }
  0x44   : > { %1156 = vmatpush3.bf16.msra.mxu0 %v1252_v60  ;;  %v1074_v60 = vld [vmem:[%s1490_s2] ss:$0 sm:$0xff] }
  0x47   : > { %802 = vmatmul.mubr.bf16.vlgmr.msra.gmra.mrb[8].mxu0 %v1253_v61 }
  0x48   : > { %809 = vmatprep.mubr.bf16.mxu0 %v1259_v62 }
  0x4f   : > { %810 = vmatmul.mubr.bf16.gmra.mrb[12].mxu0 %v1261_v63 }
  0xfa   : > { %v1101_v0 = vpop.f32.mrb[0].mxu0 }
  0xfb   : > { %v1129_v1 = vpop.f32.mrb[0].mxu1  ;;  %v1102_v2 = vpop.f32.mrb[1].mxu0 }
  0xfc   : > { %v1103_v3 = vadd.f32 %v1102_v2, %v1101_v0  ;;  %v1130_v4 = vpop.f32.mrb[1].mxu1  ;;  %v1104_v5 = vpop.f32.mrb[2].mxu0 }
  0xfd   : > { %v1131_v6 = vadd.f32 %v1130_v4, %v1129_v1  ;;  %v1132_v7 = vpop.f32.mrb[2].mxu1  ;;  %v1105_v8 = vpop.f32.mrb[3].mxu0 }
  0xfe   : > { %v1106_v9 = vadd.f32 %v1105_v8, %v1104_v5  ;;  %v1133_v10 = vpop.f32.mrb[3].mxu1 }
  0xff   : > { %v755_v11 = vadd.f32 %v1131_v6, %v1103_v3  ;;  %v1134_v12 = vadd.f32 %v1133_v10, %v1132_v7 }
 0x101   : > { %v758_v13 = vadd.f32 %v1134_v12, %v1106_v9 }
 0x102   : > { %v1107_v14 = vpop.f32.mrb[4].mxu0 }
 0x103   : > { %v1135_v15 = vpop.f32.mrb[4].mxu1  ;;  %v1108_v16 = vpop.f32.mrb[5].mxu0 }
 0x104   : > { %v1109_v17 = vadd.f32 %v1108_v16, %v1107_v14  ;;  %v1136_v18 = vpop.f32.mrb[5].mxu1  ;;  %v1110_v19 = vpop.f32.mrb[6].mxu0 }
 0x105   : > { %v1137_v20 = vadd.f32 %v1136_v18, %v1135_v15  ;;  %v1138_v21 = vpop.f32.mrb[6].mxu1  ;;  %v1111_v22 = vpop.f32.mrb[7].mxu0 }
 0x106   : > { %v1112_v23 = vadd.f32 %v1111_v22, %v1110_v19  ;;  %v1139_v24 = vpop.f32.mrb[7].mxu1 }
 0x107   : > { %v763_v25 = vadd.f32 %v1137_v20, %v1109_v17  ;;  %v1140_v26 = vadd.f32 %v1139_v24, %v1138_v21 }
 0x109   : > { %v766_v27 = vadd.f32 %v1140_v26, %v1112_v23 }
 0x10b   : > { %v1179_v28 = vpop.f32.mrb[8].mxu1 }
 0x10c   : > { %v852_v29 = vpop.f32.mrb[9].mxu1 }
 0x10d   : > { %v1180_v30 = vpop.f32.mrb[10].mxu1 }
 0x10e   : > { %v855_v31 = vpop.f32.mrb[11].mxu1 }
 0x11a   : > { %v1157_v32 = vpop.f32.mrb[8].mxu0 }
 0x11b   : > { %v1158_v33 = vpop.f32.mrb[9].mxu0 }
 0x11c   : > { %v1159_v34 = vadd.f32 %v1158_v33, %v1157_v32  ;;  %v1160_v35 = vpop.f32.mrb[10].mxu0 }
 0x11d   : > { %v1161_v36 = vpop.f32.mrb[11].mxu0 }
 0x11e   : > { %v1162_v37 = vadd.f32 %v1161_v36, %v1160_v35  ;;  %v804_v38 = vadd.f32 %v1159_v34, %v755_v11 }
 0x120   : > { %v853_v39 = vadd.f32 %v852_v29, %v804_v38  ;;  %v807_v40 = vadd.f32 %v1162_v37, %v758_v13 }
 0x122   : > { %v856_v41 = vadd.f32 %v855_v31, %v807_v40  ;;  %v1163_v42 = vpop.f32.mrb[12].mxu0  ;;  %871 = vrot.lane.b32.xlu0 %v853_v39, %s1270_s13 }
 0x123   : > { %v1164_v43 = vpop.f32.mrb[13].mxu0 }
 0x124   : > { %v1165_v44 = vadd.f32 %v1164_v43, %v1163_v42  ;;  %v1166_v45 = vpop.f32.mrb[14].mxu0 }
 0x125   : > { %v1167_v46 = vpop.f32.mrb[15].mxu0 }
 0x126   : > { %v812_v47 = vadd.f32 %v1165_v44, %v763_v25  ;;  %v1168_v48 = vadd.f32 %v1167_v46, %v1166_v45  ;;  %873 = vrot.lane.b32.xlu0 %v856_v41, %s1270_s13 }
 0x128   : > { %v815_v49 = vadd.f32 %v1168_v48, %v766_v27  ;;  %v861_v50 = vadd.f32 %v1179_v28, %v812_v47 }
 0x12a   : > { %875 = vrot.lane.b32.xlu1 %v861_v50, %s1270_s13  ;;  %v864_v51 = vadd.f32 %v1180_v30, %v815_v49 }
 0x12e   : > { %877 = vrot.lane.b32.xlu1 %v864_v51, %s1270_s13 }
 0x194   : > { %v872_v52 = vpop.permute.xlu0 %871 }
 0x195   : > { %v883_v53 = vmax.f32 %v853_v39, %v872_v52 }
 0x197   : > { %891 = vrot.lane.b32.xlu0 %v883_v53, %s1271_s20 }
 0x198   : > { %v874_v54 = vpop.permute.xlu0 %873 }
 0x199   : > { %v884_v55 = vmax.f32 %v856_v41, %v874_v54 }
 0x19b   : > { %893 = vrot.lane.b32.xlu1 %v884_v55, %s1271_s20 }
 0x19c   : > { %v876_v56 = vpop.permute.xlu1 %875 }
 0x19d   : > { %v885_v57 = vmax.f32 %v861_v50, %v876_v56 }
 0x19f   : > { %895 = vrot.lane.b32.xlu0 %v885_v57, %s1271_s20 }
 0x1a0   : > { %v878_v58 = vpop.permute.xlu1 %877 }
 0x1a1   : > { %v886_v59 = vmax.f32 %v864_v51, %v878_v58 }
 0x1a3   : > { %897 = vrot.lane.b32.xlu1 %v886_v59, %s1271_s20 }
 0x209   : > { %v892_v61 = vpop.permute.xlu0 %891 }
 0x20a   : > { %v903_v62 = vmax.f32 %v883_v53, %v892_v61 }
 0x20c   : > { %v914_v63 = vadd.f32 %v1074_v60, %v903_v62 }
 0x20d   : > { %v894_v0 = vpop.permute.xlu1 %893 }
 0x20e   : > { %v918_v1 = vmax.f32 %v914_v63, 0.0  ;;  %v904_v2 = vmax.f32 %v884_v55, %v894_v0 }
 0x210   : > { %v1081_v3 = vpack.c.bf16 %v918_v1, %v918_v1  ;;  %v915_v4 = vadd.f32 %v1074_v60, %v904_v2 }
 0x211   : > { %v896_v5 = vpop.permute.xlu0 %895 }
 0x212   : > { %939 = vst.msk [vmem:[%s175_s26] sm:$0xf] %vm938_vm1, %v1081_v3  ;;  %v919_v6 = vmax.f32 %v915_v4, 0.0  ;;  %v905_v7 = vmax.f32 %v885_v57, %v896_v5 }
 0x214   : > { %v1082_v8 = vpack.c.bf16 %v919_v6, %v919_v6  ;;  %v916_v9 = vadd.f32 %v1074_v60, %v905_v7 }
 0x215   : > { %v898_v10 = vpop.permute.xlu1 %897 }
 0x216   : > { %940 = vst.msk [vmem:[%s175_s26 + $0x4] sm:$0xf] %vm938_vm1, %v1082_v8  ;;  %v920_v11 = vmax.f32 %v916_v9, 0.0  ;;  %v906_v12 = vmax.f32 %v886_v59, %v898_v10 }
 0x218   : > { %v1083_v13 = vpack.c.bf16 %v920_v11, %v920_v11  ;;  %v917_v14 = vadd.f32 %v1074_v60, %v906_v12 }
 0x21a   : > { %941 = vst.msk [vmem:[%s175_s26 + $0x8] sm:$0xf] %vm938_vm1, %v1083_v13  ;;  %v921_v15 = vmax.f32 %v917_v14, 0.0 }
 0x21c   : > { %v1084_v16 = vpack.c.bf16 %v921_v15, %v921_v15 }
 0x21e   : > { %942 = vst.msk [vmem:[%s175_s26 + $0xc] sm:$0xf] %vm938_vm1, %v1084_v16 }
 0x21f PF: > { %s13_s12 = sadd.s32 1, %s1268_s12  }
 0x220   : > { %p10_p4 = scmp.ge.s32.totalorder %s13_s12, 4  }
 0x222   :  { %12 = sbr.rel (!%p10_p4) target bundleno = 1 (0x1), region = 62 }

// kernel: forward.5
= control target key start
LH: loop header
LB: loop body
LE: loop exit
PB: predicated region body
PF: predicated region fallthrough
CT: control target
= control target key end

     0   :  { %s1227_s24 = smov 0   ;;  %s1421_s0 = inlined_call_operand.vmem [shape: bf16[32,512], index: 0, kind: input, shape index: {}]   ;;  %s1422_s1 = inlined_call_operand.vmem [shape: bf16[512,128], index: 1, kind: input, shape index: {}]   ;;  %s1423_s2 = inlined_call_operand.vmem [shape: f32[1,128], index: 2, kind: input, shape index: {}]   ;;  %s1424_s3 = inlined_call_operand.vmem [shape: bf16[128,128], index: 3, kind: input, shape index: {}]   ;;  %s1425_s4 = inlined_call_operand.vmem [shape: f32[1,128], index: 4, kind: input, shape index: {}]   ;;  %s1426_s5 = inlined_call_operand.vmem [shape: bf16[128,128], index: 5, kind: input, shape index: {}]   ;;  %s1427_s6 = inlined_call_operand.vmem [shape: f32[1,128], index: 6, kind: input, shape index: {}]   ;;  %s1428_s7 = inlined_call_operand.vmem [shape: f32[32,128], index: 7, kind: output, shape index: {}]  }
   0x1 LB: > { %s943_s25 = sadd.s32 4294967295, %s1183_s24   ;;  %p947_p0 = scmp.ge.s32.totalorder %s1183_s24, 1  ;;  %s1183_s24 = sphi %s1227_s24, %s17_s24  }
   0x2   : > { %p239_p1 = scmp.lt.s32.totalorder %s1183_s24, 3 }
   0x4   : > { %p240_p2 = pnand %p947_p0, %p239_p1 }
   0x5   : > { %v1123_v0 = vld [vmem:[%s1422_s1 + $0x40] sm:$0xff] (!%p240_p2)   ;;  %v1127_v4 = vld [vmem:[%s1422_s1 + $0x48] sm:$0xff] (!%p240_p2)   ;;  %v1131_v8 = vld [vmem:[%s1422_s1 + $0x50] sm:$0xff] (!%p240_p2)   ;;  %s948_s14 = sshll.u32 (!%p240_p2), %s943_s25, 1  ;;  %v1185_v34 = vmov (!%p240_p2), 0.0   ;;  %vm1186_vm0 = vmmov (!%p240_p2), 0  }
   0x6   : > { %243 = sbr.rel (%p240_p2) target bundleno = 701 (0x2bd), region = 48  ;;  %v1124_v1 = vld [vmem:[%s1422_s1 + $0xc0] sm:$0xff] (!%p240_p2)   ;;  %1011 = vmatprep.subr.bf16.mxu0 (!%p240_p2), %v1123_v0  ;;  %v1128_v5 = vld [vmem:[%s1422_s1 + $0xc8] sm:$0xff] (!%p240_p2)   ;;  %v1132_v9 = vld [vmem:[%s1422_s1 + $0xd0] sm:$0xff] (!%p240_p2)   ;;  %p273_p3 = scmp.lt.s32.totalorder (!%p240_p2), %s948_s14, 3 }
   0x7   : > { %v1125_v2 = vld [vmem:[%s1422_s1] sm:$0xff] (!%p240_p2)   ;;  %1033 = vmatprep.subr.bf16.mxu1 (!%p240_p2), %v1124_v1  ;;  %v1129_v6 = vld [vmem:[%s1422_s1 + $0x8] sm:$0xff] (!%p240_p2)   ;;  %v1133_v10 = vld [vmem:[%s1422_s1 + $0x10] sm:$0xff] (!%p240_p2)  }
   0x8   : > { %v1126_v3 = vld [vmem:[%s1422_s1 + $0x80] sm:$0xff] (!%p240_p2)   ;;  %1012 = vmatpush3.bf16.msra.mxu0 (!%p240_p2), %v1125_v2  ;;  %v1130_v7 = vld [vmem:[%s1422_s1 + $0x88] sm:$0xff] (!%p240_p2)   ;;  %v1134_v11 = vld [vmem:[%s1422_s1 + $0x90] sm:$0xff] (!%p240_p2)  }
   0x9   : > { %1034 = vmatpush3.bf16.msra.mxu1 (!%p240_p2), %v1126_v3  ;;  %1013 = vmatprep.subr.bf16.mxu0 (!%p240_p2), %v1127_v4  ;;  %v1135_v12 = vld [vmem:[%s1422_s1 + $0x58] sm:$0xff] (!%p240_p2)   ;;  %v1139_v16 = vld [vmem:[%s1422_s1 + $0x60] sm:$0xff] (!%p240_p2)   ;;  %v1143_v20 = vld [vmem:[%s1422_s1 + $0x68] sm:$0xff] (!%p240_p2)  }
   0xa   : > { %1035 = vmatprep.subr.bf16.mxu1 (!%p240_p2), %v1128_v5  ;;  %v1136_v13 = vld [vmem:[%s1422_s1 + $0xd8] sm:$0xff] (!%p240_p2)   ;;  %v1140_v17 = vld [vmem:[%s1422_s1 + $0xe0] sm:$0xff] (!%p240_p2)   ;;  %v1144_v21 = vld [vmem:[%s1422_s1 + $0xe8] sm:$0xff] (!%p240_p2)  }
   0xb   : > { %v1137_v14 = vld [vmem:[%s1422_s1 + $0x18] sm:$0xff] (!%p240_p2)   ;;  %v1141_v18 = vld [vmem:[%s1422_s1 + $0x20] sm:$0xff] (!%p240_p2)   ;;  %v1145_v22 = vld [vmem:[%s1422_s1 + $0x28] sm:$0xff] (!%p240_p2)  }
   0xc   : > { %1014 = vmatpush3.bf16.msra.mxu0 (!%p240_p2), %v1129_v6  ;;  %v1138_v15 = vld [vmem:[%s1422_s1 + $0x98] sm:$0xff] (!%p240_p2)   ;;  %v1142_v19 = vld [vmem:[%s1422_s1 + $0xa0] sm:$0xff] (!%p240_p2)   ;;  %v1146_v23 = vld [vmem:[%s1422_s1 + $0xa8] sm:$0xff] (!%p240_p2)  }
   0xd   : > { %1036 = vmatpush3.bf16.msra.mxu1 %v1130_v7  ;;  %1015 = vmatprep.subr.bf16.mxu0 %v1131_v8  ;;  %s1430_s14 = smov (!%p273_p3, %s948_s14), 3  ;;  %v1147_v24 = vld [vmem:[%s1422_s1 + $0x70] sm:$0xff]   ;;  %v1151_v28 = vld [vmem:[%s1422_s1 + $0x78] sm:$0xff]   ;;  %v1161_v37 = vld [vmem:[%s1424_s3] sm:$0xff]  }
   0xe   : > { %1037 = vmatprep.subr.bf16.mxu1 %v1132_v9  ;;  %v1148_v25 = vld [vmem:[%s1422_s1 + $0xf0] sm:$0xff]   ;;  %s1010_s16 = sshll.u32 %s1430_s14, 4  ;;  %v1152_v29 = vld [vmem:[%s1422_s1 + $0xf8] sm:$0xff]   ;;  %v1162_v38 = vld [vmem:[%s1424_s3 + $0x8] sm:$0xff]   ;;  %s952_s23 = sshll.u32 %s1430_s14, 3 }
   0xf   : > { %v1149_v26 = vld [vmem:[%s1422_s1 + $0x30] sm:$0xff]   ;;  %s277_s26 = scalar_lea.vmem %s1421_s0, %s1010_s16  ;;  %v1153_v30 = vld [vmem:[%s1422_s1 + $0x38] sm:$0xff]   ;;  %v1165_v41 = vld [vmem:[%s1424_s3 + $0x20] sm:$0xff]   ;;  %s283_s30 = scalar_lea.vmem %s1428_s7, %s952_s23 }
  0x10   : > { %1016 = vmatpush3.bf16.msra.mxu0 %v1133_v10  ;;  %v1150_v27 = vld [vmem:[%s1422_s1 + $0xb0] sm:$0xff]   ;;  %v1154_v31 = vld [vmem:[%s1422_s1 + $0xb8] sm:$0xff]   ;;  %v1166_v42 = vld [vmem:[%s1424_s3 + $0x28] sm:$0xff]  }
  0x11   : > { %1038 = vmatpush3.bf16.msra.mxu1 %v1134_v11  ;;  %1017 = vmatprep.subr.bf16.mxu0 %v1135_v12  ;;  %v1155_v32 = vld [vmem:[%s277_s26] ss:$16 sps:$4 sm:$0xff]   ;;  %v1157_v33 = vld [vmem:[%s277_s26 + $0x4] ss:$16 sps:$4 sm:$0xff]   ;;  %v1158_v35 = vld [vmem:[%s277_s26 + $0x8] ss:$16 sps:$4 sm:$0xff]  }
  0x12   : > { %1039 = vmatprep.subr.bf16.mxu1 %v1136_v13  ;;  %v1160_v36 = vld [vmem:[%s277_s26 + $0xc] ss:$16 sps:$4 sm:$0xff]   ;;  %605 = vmatprep.mubr.bf16.mxu0 %v1157_v33  ;;  %v1163_v39 = vld [vmem:[%s1424_s3 + $0x10] sm:$0xff]   ;;  %v1169_v45 = vld [vmem:[%s1426_s5] sm:$0xff]  }
  0x13   : > { %646 = vmatprep.mubr.bf16.mxu1 %v1160_v36  ;;  %v1164_v40 = vld [vmem:[%s1424_s3 + $0x18] sm:$0xff]   ;;  %v1167_v43 = vld [vmem:[%s1424_s3 + $0x30] sm:$0xff]   ;;  %v1170_v46 = vld [vmem:[%s1426_s5 + $0x8] sm:$0xff]  }
  0x14   : > { %1018 = vmatpush3.bf16.msra.mxu0 %v1137_v14  ;;  %v1168_v44 = vld [vmem:[%s1424_s3 + $0x38] sm:$0xff]   ;;  %v1171_v47 = vld [vmem:[%s1426_s5 + $0x10] sm:$0xff]   ;;  %v1173_v49 = vld [vmem:[%s1426_s5 + $0x20] sm:$0xff]  }
  0x15   : > { %1040 = vmatpush3.bf16.msra.mxu1 %v1138_v15  ;;  %1019 = vmatprep.subr.bf16.mxu0 %v1139_v16  ;;  %v1172_v48 = vld [vmem:[%s1426_s5 + $0x18] sm:$0xff]   ;;  %v1174_v50 = vld [vmem:[%s1426_s5 + $0x28] sm:$0xff]   ;;  %v953_v53 = vld [vmem:[%s1423_s2] ss:$0 sm:$0xff] }
  0x16   : > { %1041 = vmatprep.subr.bf16.mxu1 %v1140_v17  ;;  %v1175_v7 = vld [vmem:[%s1426_s5 + $0x30] sm:$0xff]   ;;  %v1176_v8 = vld [vmem:[%s1426_s5 + $0x38] sm:$0xff]   ;;  %v990_v9 = vld [vmem:[%s1425_s4] ss:$0 sm:$0xff] }
  0x18   : > { %1020 = vmatpush3.bf16.msra.mxu0 %v1141_v18 }
  0x19   : > { %1042 = vmatpush3.bf16.msra.mxu1 %v1142_v19  ;;  %1021 = vmatprep.subr.bf16.mxu0 %v1143_v20  ;;  %v999_v19 = vld [vmem:[%s1427_s6] ss:$0 sm:$0xff] }
  0x1a   : > { %1043 = vmatprep.subr.bf16.mxu1 %v1144_v21 }
  0x1c   : > { %1022 = vmatpush3.bf16.msra.mxu0 %v1145_v22 }
  0x1d   : > { %1044 = vmatpush3.bf16.msra.mxu1 %v1146_v23  ;;  %1023 = vmatprep.subr.bf16.mxu0 %v1147_v24 }
  0x1e   : > { %1045 = vmatprep.subr.bf16.mxu1 %v1148_v25 }
  0x20   : > { %1024 = vmatpush3.bf16.msra.mxu0 %v1149_v26 }
  0x21   : > { %1046 = vmatpush3.bf16.msra.mxu1 %v1150_v27  ;;  %1025 = vmatprep.subr.bf16.mxu0 %v1151_v28 }
  0x22   : > { %1047 = vmatprep.subr.bf16.mxu1 %v1152_v29 }
  0x24   : > { %1026 = vmatpush3.bf16.msra.mxu0 %v1153_v30 }
  0x25   : > { %1048 = vmatpush3.bf16.msra.mxu1 %v1154_v31  ;;  %1073 = vmatprep.subr.bf16.mxu0 %v1185_v34 }
  0x26   : > { %1093 = vmatprep.subr.bf16.mxu1 %v1185_v34 }
  0x27   : > { %606 = vmatmul.mubr.bf16.vlgmr.msra.gmra.mrb[0].mxu0 %v1155_v32 }
  0x28   : > { %647 = vmatmul.mubr.bf16.vlgmr.msra.gmra.mrb[0].mxu1 %v1158_v35  ;;  %1074 = vmatpush3.bf16.msra.mxu0 %v1161_v37 }
  0x29   : > { %1075 = vmatprep.subr.bf16.mxu0 %v1185_v34  ;;  %1089 = vmatprep.mubr.msk.bf16.mxu0 %vm1186_vm0, %v1185_v34 }
  0x2a   : > { %1109 = vmatprep.mubr.msk.bf16.mxu1 %vm1186_vm0, %v1185_v34  ;;  %1094 = vmatpush3.bf16.msra.mxu1 %v1169_v45 }
  0x2b   : > { %1095 = vmatprep.subr.bf16.mxu1 %v1185_v34 }
  0x2c   : > { %1076 = vmatpush3.bf16.msra.mxu0 %v1162_v38 }
  0x2d   : > { %1077 = vmatprep.subr.bf16.mxu0 %v1185_v34 }
  0x2e   : > { %1096 = vmatpush3.bf16.msra.mxu1 %v1170_v46 }
  0x2f   : > { %1097 = vmatprep.subr.bf16.mxu1 %v1185_v34 }
  0x30   : > { %1078 = vmatpush3.bf16.msra.mxu0 %v1163_v39 }
  0x31   : > { %1079 = vmatprep.subr.bf16.mxu0 %v1185_v34 }
  0x32   : > { %1098 = vmatpush3.bf16.msra.mxu1 %v1171_v47 }
  0x33   : > { %1099 = vmatprep.subr.bf16.mxu1 %v1185_v34 }
  0x34   : > { %1080 = vmatpush3.bf16.msra.mxu0 %v1164_v40 }
  0x35   : > { %1081 = vmatprep.subr.bf16.mxu0 %v1185_v34 }
  0x36   : > { %1100 = vmatpush3.bf16.msra.mxu1 %v1172_v48 }
  0x37   : > { %1101 = vmatprep.subr.bf16.mxu1 %v1185_v34 }
  0x38   : > { %1082 = vmatpush3.bf16.msra.mxu0 %v1165_v41 }
  0x39   : > { %1083 = vmatprep.subr.bf16.mxu0 %v1185_v34 }
  0x3a   : > { %1102 = vmatpush3.bf16.msra.mxu1 %v1173_v49 }
  0x3b   : > { %1103 = vmatprep.subr.bf16.mxu1 %v1185_v34 }
  0x3c   : > { %1084 = vmatpush3.bf16.msra.mxu0 %v1166_v42 }
  0x3d   : > { %1085 = vmatprep.subr.bf16.mxu0 %v1185_v34 }
  0x3e   : > { %1104 = vmatpush3.bf16.msra.mxu1 %v1174_v50 }
  0x3f   : > { %1105 = vmatprep.subr.bf16.mxu1 %v1185_v34 }
  0x40   : > { %1086 = vmatpush3.bf16.msra.mxu0 %v1167_v43 }
  0x41   : > { %1087 = vmatprep.subr.bf16.mxu0 %v1185_v34 }
  0x42   : > { %1106 = vmatpush3.bf16.msra.mxu1 %v1175_v7 }
  0x43   : > { %1107 = vmatprep.subr.bf16.mxu1 %v1185_v34 }
  0x44   : > { %1088 = vmatpush3.bf16.msra.mxu0 %v1168_v44 }
  0x46   : > { %1108 = vmatpush3.bf16.msra.mxu1 %v1176_v8 }
  0xfa   : > { %v1027_v51 = vpop.f32.mrb[0].mxu0 }
  0xfb   : > { %v1049_v52 = vpop.f32.mrb[0].mxu1  ;;  %v1028_v54 = vpop.f32.mrb[1].mxu0 }
  0xfc   : > { %v1029_v55 = vadd.f32 %v1028_v54, %v1027_v51  ;;  %v1050_v56 = vpop.f32.mrb[1].mxu1  ;;  %v1030_v57 = vpop.f32.mrb[2].mxu0 }
  0xfd   : > { %v1051_v58 = vadd.f32 %v1050_v56, %v1049_v52  ;;  %v1052_v59 = vpop.f32.mrb[2].mxu1  ;;  %v1031_v60 = vpop.f32.mrb[3].mxu0 }
  0xfe   : > { %v608_v61 = vadd.f32 %v1029_v55, %v953_v53  ;;  %v1032_v62 = vadd.f32 %v1031_v60, %v1030_v57  ;;  %v1053_v63 = vpop.f32.mrb[3].mxu1 }
  0xff   : > { %v1054_v0 = vadd.f32 %v1053_v63, %v1052_v59 }
 0x100   : > { %v649_v1 = vadd.f32 %v1051_v58, %v608_v61  ;;  %v611_v2 = vadd.f32 %v1032_v62, %v953_v53 }
 0x102   : > { %v652_v3 = vadd.f32 %v1054_v0, %v611_v2  ;;  %v655_v4 = vmax.f32 %v649_v1, 0.0 }
 0x104   : > { %v656_v5 = vmax.f32 %v652_v3, 0.0 }
 0x106   : > { %v657_v6 = vpack.c.bf16 %v656_v5, %v655_v4 }
 0x108   : > { %1090 = vmatmul.mubr.bf16.vlgmr.msra.gmra.mrb[4].mxu0 %v657_v6 }
 0x1db   : > { %v763_v10 = vpop.f32.mrb[4].mxu0 }
 0x1dc   : > { %v764_v11 = vadd.f32 %v990_v9, %v763_v10  ;;  %v1091_v12 = vpop.f32.mrb[5].mxu0 }
 0x1dd   : > { %v766_v13 = vpop.f32.mrb[6].mxu0 }
 0x1de   : > { %v767_v14 = vadd.f32 %v990_v9, %v766_v13  ;;  %v1092_v15 = vpop.f32.mrb[7].mxu0  ;;  %v770_v16 = vmax.f32 %v764_v11, 0.0 }
 0x1e0   : > { %v771_v17 = vmax.f32 %v767_v14, 0.0 }
 0x1e2   : > { %v772_v18 = vpack.c.bf16 %v771_v17, %v770_v16 }
 0x1e4   : > { %1110 = vmatmul.mubr.bf16.vlgmr.msra.gmra.mrb[4].mxu1 %v772_v18 }
 0x2b7   : > { %v878_v20 = vpop.f32.mrb[4].mxu1 }
 0x2b8   : > { %v879_v21 = vadd.f32 %v999_v19, %v878_v20  ;;  %v1111_v22 = vpop.f32.mrb[5].mxu1 }
 0x2b9   : > { %v881_v23 = vpop.f32.mrb[6].mxu1 }
 0x2ba   : > { %885 = vst [vmem:[%s283_s30] sm:$0xff] %v879_v21  ;;  %v882_v24 = vadd.f32 %v999_v19, %v881_v23  ;;  %v1112_v25 = vpop.f32.mrb[7].mxu1 }
 0x2bc   : > { %886 = vst [vmem:[%s283_s30 + $0x8] sm:$0xff] %v882_v24 }
 0x2bd PF: > { %s17_s24 = sadd.s32 1, %s1183_s24  }
 0x2be   : > { %p14_p4 = scmp.ge.s32.totalorder %s17_s24, 4  }
 0x2c0   :  { %16 = sbr.rel (!%p14_p4) target bundleno = 1 (0x1), region = 78 }

</bundles_post_ra>
